<compile_context>
chip_gen: v5e
topology: v5e:2x2
jax: 0.10.0
libtpu: 0.0.40
codegen_flags: <defaults>
</compile_context>

<pallas_src>
import functools

import numpy as np
import jax
import jax.numpy as jnp
from jax.experimental import pallas as pl
from jax.experimental.pallas import tpu as pltpu


# ----------------------------------------------------------------------------
# Helpers
# ----------------------------------------------------------------------------

_VMEM_LIMIT = 32 * 1024 * 1024       # explicit VMEM budget, safe on v5e/v6e/v7x


def _round_up(x, m):
    return (x + m - 1) // m * m


def _choose_m_tiling(m):
    """Lane-dense M tile (multiple of 128, <= 2048) and padded M extent."""
    m128 = _round_up(m, 128)
    tile = min(2048, m128)
    return tile, _round_up(m128, tile)


def _im2col_cnhw(x_cnhw, k, pad):
    """(C, N, H, W) -> (C*k*k, N*H*W), row order (c, kh, kw); stride-1 'same'."""
    c, n, h, w = x_cnhw.shape
    if k == 1 and pad == 0:
        return x_cnhw.reshape(c, n * h * w)
    xp = jnp.pad(x_cnhw, ((0, 0), (0, 0), (pad, pad), (pad, pad)))
    taps = [xp[:, :, ki:ki + h, kj:kj + w] for ki in range(k) for kj in range(k)]
    cols = jnp.stack(taps, axis=1)                 # (C, k*k, N, H, W)
    return cols.reshape(c * k * k, n * h * w)


# ----------------------------------------------------------------------------
# Pallas kernels
# ----------------------------------------------------------------------------

def _conv_leaky_kernel(cols_ref, w_ref, b_ref, o_ref):
    """(cout_pad, K) @ (K, TILE_M) + bias + LeakyReLU(0.1); f32 accumulate."""
    acc = jnp.dot(w_ref[...], cols_ref[...], preferred_element_type=jnp.float32)
    y = acc + b_ref[...]
    y = jnp.maximum(y, 0.1 * y)
    o_ref[...] = y.astype(o_ref.dtype)


def _make_pool_kernel(h, w):
    """MaxPool 2x2/s2 on rows of flattened (H*W) images.

    Vertical max: contiguous row slices.  Horizontal max: two 0/1 selection
    matmuls (even / odd columns) -> exact, robust lowering, no strided ops.
    """
    ho, wo = h // 2, w // 2

    def kernel(x_ref, se_ref, so_ref, o_ref):
        for r in range(ho):
            top = x_ref[:, (2 * r) * w:(2 * r) * w + w]
            bot = x_ref[:, (2 * r + 1) * w:(2 * r + 1) * w + w]
            vm = jnp.maximum(top, bot)
            a = jnp.dot(vm, se_ref[...], preferred_element_type=jnp.float32)
            b = jnp.dot(vm, so_ref[...], preferred_element_type=jnp.float32)
            o_ref[:, r * wo:(r + 1) * wo] = jnp.maximum(a, b).astype(o_ref.dtype)

    return kernel


def _make_head_kernel(nx, ny, stride, tile_m):
    """Fused 1x1 head conv (+bias, linear) and YOLO decode.

    Inputs : cols (K, TILE_M) bf16, w (cout_pad, K) bf16, bias (cout_pad, 1),
             meta (cout_pad, 4) = [sel_x, sel_y, sel_wh, anchor_component].
    Outputs: p (raw logits) and io (decoded), both (cout_pad, TILE_M) f32.
    Rows are (a*no + j); columns are m = n*ny*nx + gy*nx + gx.
    """
    nxf, nyf, sf = float(nx), float(ny), float(stride)

    def kernel(cols_ref, w_ref, b_ref, meta_ref, p_ref, io_ref):
        acc = jnp.dot(w_ref[...], cols_ref[...],
                      preferred_element_type=jnp.float32)
        p = acc + b_ref[...]
        p_ref[...] = p

        sel_x = meta_ref[:, 0:1]
        sel_y = meta_ref[:, 1:2]
        sel_wh = meta_ref[:, 2:3]
        amul = meta_ref[:, 3:4]
        sel_xy = sel_x + sel_y

        # Global column index -> grid cell (gx, gy); small-value-safe f32 math.
        base = (pl.program_id(0) * tile_m).astype(jnp.float32)
        col = jax.lax.broadcasted_iota(jnp.int32, (1, p.shape[1]), 1)
        col = col.astype(jnp.float32) + base
        q1 = jnp.floor((col + 0.5) / nxf)          # n*ny + gy
        gx = col - q1 * nxf
        gy = q1 - jnp.floor((q1 + 0.5) / nyf) * nyf

        sig = 1.0 / (1.0 + jnp.exp(-p))
        xy = (sig + sel_x * gx + sel_y * gy) * sf
        wh = jnp.exp(p * sel_wh) * amul            # amul already in pixel units
        io_ref[...] = sel_xy * xy + sel_wh * wh + (1.0 - sel_xy - sel_wh) * sig

    return kernel


# ----------------------------------------------------------------------------
# Layer wrappers
# ----------------------------------------------------------------------------

def conv_bn_leaky(x_cnhw, weight, scale, bias, *, k, pad):
    """Conv2d(stride=1) + folded BN + LeakyReLU(0.1).  (C,N,H,W) in/out, bf16."""
    cout = weight.shape[0]
    c, n, h, w_sp = x_cnhw.shape
    m = n * h * w_sp

    cols = _im2col_cnhw(x_cnhw.astype(jnp.bfloat16), k, pad)
    kdim = cols.shape[0]
    kpad = _round_up(kdim, 16)
    cpad = _round_up(cout, 8)
    tile_m, m_pad = _choose_m_tiling(m)

    cols = jnp.pad(cols, ((0, kpad - kdim), (0, m_pad - m)))
    w2d = (weight.reshape(cout, kdim) * scale[:, None]).astype(jnp.bfloat16)
    w2d = jnp.pad(w2d, ((0, cpad - cout), (0, kpad - kdim)))
    b = jnp.pad(bias.astype(jnp.float32), (0, cpad - cout)).reshape(cpad, 1)

    grid = (m_pad // tile_m,)
    bytes_accessed = int(cols.size * 2 + w2d.size * 2 + b.size * 4
                         + cpad * m_pad * 2)
    out = pl.pallas_call(
        _conv_leaky_kernel,
        out_shape=jax.ShapeDtypeStruct((cpad, m_pad), jnp.bfloat16),
        grid=grid,
        in_specs=[
            pl.BlockSpec((kpad, tile_m), lambda i: (0, i)),
            pl.BlockSpec((cpad, kpad), lambda i: (0, 0)),
            pl.BlockSpec((cpad, 1), lambda i: (0, 0)),
        ],
        out_specs=pl.BlockSpec((cpad, tile_m), lambda i: (0, i)),
        compiler_params=pltpu.CompilerParams(
            dimension_semantics=("parallel",),
            vmem_limit_bytes=_VMEM_LIMIT),
        cost_estimate=pl.CostEstimate(
            flops=int(2 * cpad * kpad * m_pad),
            transcendentals=0,
            bytes_accessed=bytes_accessed),
    )(cols, w2d, b)

    out = out[:cout, :m]
    return out.reshape(cout, n, h, w_sp)


def maxpool_2x2_s2(x_cnhw):
    """MaxPool2d(kernel=2, stride=2, pad=0).  (C,N,H,W) in/out, single pass."""
    c, n, h, w = x_cnhw.shape
    ho, wo = h // 2, w // 2
    cn = c * n
    xr = x_cnhw.reshape(cn, h * w)                 # free view (contiguous)

    se = np.zeros((w, wo), np.float32)
    so = np.zeros((w, wo), np.float32)
    se[np.arange(wo) * 2, np.arange(wo)] = 1.0
    so[np.arange(wo) * 2 + 1, np.arange(wo)] = 1.0
    se = jnp.asarray(se, jnp.bfloat16)
    so = jnp.asarray(so, jnp.bfloat16)

    tile_cn = cn                                   # tiny for this cfg; rows % 8 == 0
    grid = (cn // tile_cn,)
    out = pl.pallas_call(
        _make_pool_kernel(h, w),
        out_shape=jax.ShapeDtypeStruct((cn, ho * wo), x_cnhw.dtype),
        grid=grid,
        in_specs=[
            pl.BlockSpec((tile_cn, h * w), lambda i: (i, 0)),
            pl.BlockSpec((w, wo), lambda i: (0, 0)),
            pl.BlockSpec((w, wo), lambda i: (0, 0)),
        ],
        out_specs=pl.BlockSpec((tile_cn, ho * wo), lambda i: (i, 0)),
        compiler_params=pltpu.CompilerParams(
            dimension_semantics=("parallel",),
            vmem_limit_bytes=_VMEM_LIMIT),
    )(xr, se, so)
    return out.reshape(c, n, ho, wo)


def _build_head_meta(anchors, na, no, cpad):
    """Per-row decode table: [sel_x, sel_y, sel_wh, anchor_component]."""
    anchors = np.asarray(anchors, np.float32)
    meta = np.zeros((cpad, 4), np.float32)
    meta[:, 3] = 1.0
    for a in range(na):
        for j in range(no):
            r = a * no + j
            if j == 0:
                meta[r, 0] = 1.0
            elif j == 1:
                meta[r, 1] = 1.0
            elif j in (2, 3):
                meta[r, 2] = 1.0
                meta[r, 3] = anchors[a, j - 2]     # exp(p)*anchor (pixel units)
    return jnp.asarray(meta)


def conv_head_yolo(x_cnhw, weight, bias, anchors, nc, stride):
    """Fused 1x1 conv (bias, linear) + YOLOLayer.forward (eval mode)."""
    cout = weight.shape[0]
    c, n, ny, nx = x_cnhw.shape
    na = anchors.shape[0]
    no = nc + 5
    m = n * ny * nx

    cols = x_cnhw.astype(jnp.bfloat16).reshape(c, m)
    kpad = _round_up(c, 16)
    cpad = _round_up(cout, 8)
    tile_m, m_pad = _choose_m_tiling(m)

    cols = jnp.pad(cols, ((0, kpad - c), (0, m_pad - m)))
    w2d = jnp.pad(weight.reshape(cout, c).astype(jnp.bfloat16),
                  ((0, cpad - cout), (0, kpad - c)))
    b = jnp.pad(bias.astype(jnp.float32), (0, cpad - cout)).reshape(cpad, 1)
    meta = _build_head_meta(anchors, na, no, cpad)

    grid = (m_pad // tile_m,)
    p_pad, io_pad = pl.pallas_call(
        _make_head_kernel(nx=nx, ny=ny, stride=float(stride), tile_m=tile_m),
        out_shape=(jax.ShapeDtypeStruct((cpad, m_pad), jnp.float32),
                   jax.ShapeDtypeStruct((cpad, m_pad), jnp.float32)),
        grid=grid,
        in_specs=[
            pl.BlockSpec((kpad, tile_m), lambda i: (0, i)),
            pl.BlockSpec((cpad, kpad), lambda i: (0, 0)),
            pl.BlockSpec((cpad, 1), lambda i: (0, 0)),
            pl.BlockSpec((cpad, 4), lambda i: (0, 0)),
        ],
        out_specs=(pl.BlockSpec((cpad, tile_m), lambda i: (0, i)),
                   pl.BlockSpec((cpad, tile_m), lambda i: (0, i))),
        compiler_params=pltpu.CompilerParams(
            dimension_semantics=("parallel",),
            vmem_limit_bytes=_VMEM_LIMIT),
        cost_estimate=pl.CostEstimate(
            flops=int(2 * cpad * kpad * m_pad + 10 * cpad * m_pad),
            transcendentals=int(2 * cpad * m_pad),
            bytes_accessed=int(cols.size * 2 + w2d.size * 2
                               + 2 * cpad * m_pad * 4)),
    )(cols, w2d, b, meta)

    p_raw = p_pad[:cout, :m]                       # (na*no, bs*ny*nx)
    io = io_pad[:cout, :m]
    # -> PyTorch layouts: p (bs, na, ny, nx, no); io (bs, na*ny*nx, no)
    p_out = p_raw.reshape(na, no, n, ny, nx).transpose(2, 0, 3, 4, 1)
    io_out = io.reshape(na, no, n, ny, nx).transpose(2, 0, 3, 4, 1)
    return io_out.reshape(n, na * ny * nx, no), p_out


# ----------------------------------------------------------------------------
# Darknet2 (synthetic tiny cfg): conv(bn,leaky) -> maxpool -> conv(bn,leaky)
#                                -> conv(bias, linear) -> yolo
# ----------------------------------------------------------------------------

NC = 2                                             # classes
ANCHORS = np.array([[10., 13.], [16., 30.], [33., 23.]], np.float32)
NA = ANCHORS.shape[0]
NO = NC + 5
YOLO_STRIDE = 32                                   # yolo_index 0 -> [32,16,8,4,2][0]


def init_params(key):
    def conv_params(k_, cin, cout, ksz, bn):
        kw, kb, kg, kbt, km, kv = jax.random.split(k_, 6)
        w = jax.random.normal(kw, (cout, cin, ksz, ksz), jnp.float32) * 0.1
        if bn:
            gamma = jax.random.uniform(kg, (cout,), minval=0.5, maxval=1.5)
            beta = jax.random.normal(kbt, (cout,)) * 0.1
            mean = jax.random.normal(km, (cout,)) * 0.1
            var = jax.random.uniform(kv, (cout,), minval=0.5, maxval=1.5)
            eps = 1e-4
            scale = gamma / jnp.sqrt(var + eps)
            bias = beta - mean * scale
        else:
            scale = jnp.ones((cout,), jnp.float32)
            bias = jax.random.normal(kb, (cout,)) * 0.1
        return dict(w=w, scale=scale, bias=bias)

    k1, k2, k3 = jax.random.split(key, 3)
    return {
        'conv1': conv_params(k1, 3, 8, 3, bn=True),          # 3 -> 8, k3, pad1
        'conv2': conv_params(k2, 8, 16, 3, bn=True),          # 8 -> 16, k3, pad1
        'conv3': conv_params(k3, 16, NA * NO, 1, bn=False),   # 16 -> 21, k1
    }


def darknet2_forward(params, x):
    """Eval-mode Darknet2.forward.  x: (N, 3, H, W) NCHW float32."""
    x = jnp.transpose(x, (1, 0, 2, 3))             # NCHW -> CNHW (internal layout)
    p1 = params['conv1']
    x = conv_bn_leaky(x, p1['w'], p1['scale'], p1['bias'], k=3, pad=1)
    x = maxpool_2x2_s2(x)
    p2 = params['conv2']
    x = conv_bn_leaky(x, p2['w'], p2['scale'], p2['bias'], k=3, pad=1)
    p3 = params['conv3']
    io, p = conv_head_yolo(x, p3['w'], p3['bias'], ANCHORS, NC, YOLO_STRIDE)
    # single yolo head -> concat over heads is trivial
    x_cat = io                                     # (bs, na*ny*nx, no)
    return x_cat, (p,)


if __name__ == "__main__":
    key = jax.random.PRNGKey(0)
    kx, kp = jax.random.split(key)
    params = init_params(kp)
    x = jax.random.normal(kx, (2, 3, 16, 16), jnp.float32)

    fwd = jax.jit(functools.partial(darknet2_forward, params))
    x_cat, p_list = fwd(x)
    jax.block_until_ready((x_cat, p_list))

    assert x_cat.shape == (2, NA * 8 * 8, NO), x_cat.shape
    assert p_list[0].shape == (2, NA, 8, 8, NO), p_list[0].shape
    assert bool(jnp.all(jnp.isfinite(x_cat))) and bool(jnp.all(jnp.isfinite(p_list[0])))
    print("KERNEL_OK")
</pallas_src>

<mosaic_0001>
module attributes {stable_mosaic.version = 11 : i64} {
  func.func @_conv_leaky_kernel(%arg0: i32, %arg1: memref<32x512xbf16, #tpu.memory_space<vmem>>, %arg2: memref<8x32xbf16, #tpu.memory_space<vmem>>, %arg3: memref<8x1xf32, #tpu.memory_space<vmem>>, %arg4: memref<8x512xbf16, #tpu.memory_space<vmem>>) attributes {dimension_semantics = [#tpu.dimension_semantics<parallel>], iteration_bounds = array<i64: 1>, scalar_prefetch = 0 : i64, scratch_operands = 0 : i64, tpu.core_type = #tpu.core_type<tc>, window_params = [{transform_indices = @transform_0, window_bounds = array<i64: 32, 512>}, {pipeline_mode = #tpu.pipeline_mode<synchronous>, transform_indices = @transform_1, window_bounds = array<i64: 8, 32>}, {pipeline_mode = #tpu.pipeline_mode<synchronous>, transform_indices = @transform_2, window_bounds = array<i64: 8, 1>}, {transform_indices = @transform_3, window_bounds = array<i64: 8, 512>}]} {
    %c0 = arith.constant 0 : index
    %c0_0 = arith.constant 0 : index
    %0 = vector.load %arg2[%c0, %c0_0] : memref<8x32xbf16, #tpu.memory_space<vmem>>, vector<8x32xbf16>
    %c0_1 = arith.constant 0 : index
    %c0_2 = arith.constant 0 : index
    %1 = vector.load %arg1[%c0_1, %c0_2] : memref<32x512xbf16, #tpu.memory_space<vmem>>, vector<32x512xbf16>
    %cst = arith.constant dense<0.000000e+00> : vector<8x512xf32>
    %2 = tpu.matmul %0, %1, %cst {dimension_numbers = #tpu.dot_dimension_numbers<[1], [0], [0], [1], [0, 0, 1, 1], [], []>} : vector<8x32xbf16>, vector<32x512xbf16>, vector<8x512xf32> -> vector<8x512xf32>
    %c0_3 = arith.constant 0 : index
    %c0_4 = arith.constant 0 : index
    %3 = vector.load %arg3[%c0_3, %c0_4] : memref<8x1xf32, #tpu.memory_space<vmem>>, vector<8x1xf32>
    %4 = vector.broadcast %3 : vector<8x1xf32> to vector<8x512xf32>
    %5 = arith.addf %2, %4 : vector<8x512xf32>
    %cst_5 = arith.constant 1.000000e-01 : f32
    %6 = vector.broadcast %cst_5 : f32 to vector<8x512xf32>
    %7 = arith.mulf %6, %5 : vector<8x512xf32>
    %8 = arith.maximumf %5, %7 : vector<8x512xf32>
    %9 = arith.truncf %8 : vector<8x512xf32> to vector<8x512xbf16>
    %c0_6 = arith.constant 0 : index
    %c0_7 = arith.constant 0 : index
    %10 = vector.load %arg4[%c0_6, %c0_7] : memref<8x512xbf16, #tpu.memory_space<vmem>>, vector<8x512xbf16>
    tpu.vector_store %arg4[%c0_6, %c0_7], %9 {strides = array<i32>} : memref<8x512xbf16, #tpu.memory_space<vmem>>, vector<8x512xbf16>,
    return
  }
  func.func @transform_0(%arg0: i32) -> (i32, i32) {
    %c0_i32 = arith.constant 0 : i32
    %c0_i32_0 = arith.constant 0 : i32
    return %c0_i32, %arg0 : i32, i32
  }
  func.func @transform_1(%arg0: i32) -> (i32, i32) {
    %c0_i32 = arith.constant 0 : i32
    %c0_i32_0 = arith.constant 0 : i32
    %c0_i32_1 = arith.constant 0 : i32
    return %c0_i32, %c0_i32_0 : i32, i32
  }
  func.func @transform_2(%arg0: i32) -> (i32, i32) {
    %c0_i32 = arith.constant 0 : i32
    %c0_i32_0 = arith.constant 0 : i32
    %c0_i32_1 = arith.constant 0 : i32
    return %c0_i32, %c0_i32_0 : i32, i32
  }
  func.func @transform_3(%arg0: i32) -> (i32, i32) {
    %c0_i32 = arith.constant 0 : i32
    %c0_i32_0 = arith.constant 0 : i32
    return %c0_i32, %arg0 : i32, i32
  }
}

module attributes {stable_mosaic.version = 11 : i64} {
  func.func @kernel(%arg0: i32, %arg1: memref<16x256xbf16, #tpu.memory_space<vmem>>, %arg2: memref<16x8xbf16, #tpu.memory_space<vmem>>, %arg3: memref<16x8xbf16, #tpu.memory_space<vmem>>, %arg4: memref<16x64xbf16, #tpu.memory_space<vmem>>) attributes {dimension_semantics = [#tpu.dimension_semantics<parallel>], iteration_bounds = array<i64: 1>, scalar_prefetch = 0 : i64, scratch_operands = 0 : i64, tpu.core_type = #tpu.core_type<tc>, window_params = [{transform_indices = @transform_0, window_bounds = array<i64: 16, 256>}, {pipeline_mode = #tpu.pipeline_mode<synchronous>, transform_indices = @transform_1, window_bounds = array<i64: 16, 8>}, {pipeline_mode = #tpu.pipeline_mode<synchronous>, transform_indices = @transform_2, window_bounds = array<i64: 16, 8>}, {transform_indices = @transform_3, window_bounds = array<i64: 16, 64>}]} {
    %c0 = arith.constant 0 : index
    %c0_0 = arith.constant 0 : index
    %0 = vector.load %arg1[%c0, %c0_0] : memref<16x256xbf16, #tpu.memory_space<vmem>>, vector<16x16xbf16>
    %c0_1 = arith.constant 0 : index
    %c16 = arith.constant 16 : index
    %1 = vector.load %arg1[%c0_1, %c16] : memref<16x256xbf16, #tpu.memory_space<vmem>>, vector<16x16xbf16>
    %2 = arith.maximumf %0, %1 : vector<16x16xbf16>
    %c0_2 = arith.constant 0 : index
    %c0_3 = arith.constant 0 : index
    %3 = vector.load %arg2[%c0_2, %c0_3] : memref<16x8xbf16, #tpu.memory_space<vmem>>, vector<16x8xbf16>
    %cst = arith.constant dense<0.000000e+00> : vector<16x8xf32>
    %4 = tpu.matmul %2, %3, %cst {dimension_numbers = #tpu.dot_dimension_numbers<[1], [0], [0], [1], [0, 0, 1, 1], [], []>} : vector<16x16xbf16>, vector<16x8xbf16>, vector<16x8xf32> -> vector<16x8xf32>
    %c0_4 = arith.constant 0 : index
    %c0_5 = arith.constant 0 : index
    %5 = vector.load %arg3[%c0_4, %c0_5] : memref<16x8xbf16, #tpu.memory_space<vmem>>, vector<16x8xbf16>
    %cst_6 = arith.constant dense<0.000000e+00> : vector<16x8xf32>
    %6 = tpu.matmul %2, %5, %cst_6 {dimension_numbers = #tpu.dot_dimension_numbers<[1], [0], [0], [1], [0, 0, 1, 1], [], []>} : vector<16x16xbf16>, vector<16x8xbf16>, vector<16x8xf32> -> vector<16x8xf32>
    %7 = arith.maximumf %4, %6 : vector<16x8xf32>
    %8 = arith.truncf %7 : vector<16x8xf32> to vector<16x8xbf16>
    %c0_7 = arith.constant 0 : index
    %c0_8 = arith.constant 0 : index
    %9 = vector.load %arg4[%c0_7, %c0_8] : memref<16x64xbf16, #tpu.memory_space<vmem>>, vector<16x8xbf16>
    tpu.vector_store %arg4[%c0_7, %c0_8], %8 {strides = array<i32>} : memref<16x64xbf16, #tpu.memory_space<vmem>>, vector<16x8xbf16>,
    %c0_9 = arith.constant 0 : index
    %c32 = arith.constant 32 : index
    %10 = vector.load %arg1[%c0_9, %c32] : memref<16x256xbf16, #tpu.memory_space<vmem>>, vector<16x16xbf16>
    %c0_10 = arith.constant 0 : index
    %c48 = arith.constant 48 : index
    %11 = vector.load %arg1[%c0_10, %c48] : memref<16x256xbf16, #tpu.memory_space<vmem>>, vector<16x16xbf16>
    %12 = arith.maximumf %10, %11 : vector<16x16xbf16>
    %c0_11 = arith.constant 0 : index
    %c0_12 = arith.constant 0 : index
    %13 = vector.load %arg2[%c0_11, %c0_12] : memref<16x8xbf16, #tpu.memory_space<vmem>>, vector<16x8xbf16>
    %cst_13 = arith.constant dense<0.000000e+00> : vector<16x8xf32>
    %14 = tpu.matmul %12, %13, %cst_13 {dimension_numbers = #tpu.dot_dimension_numbers<[1], [0], [0], [1], [0, 0, 1, 1], [], []>} : vector<16x16xbf16>, vector<16x8xbf16>, vector<16x8xf32> -> vector<16x8xf32>
    %c0_14 = arith.constant 0 : index
    %c0_15 = arith.constant 0 : index
    %15 = vector.load %arg3[%c0_14, %c0_15] : memref<16x8xbf16, #tpu.memory_space<vmem>>, vector<16x8xbf16>
    %cst_16 = arith.constant dense<0.000000e+00> : vector<16x8xf32>
    %16 = tpu.matmul %12, %15, %cst_16 {dimension_numbers = #tpu.dot_dimension_numbers<[1], [0], [0], [1], [0, 0, 1, 1], [], []>} : vector<16x16xbf16>, vector<16x8xbf16>, vector<16x8xf32> -> vector<16x8xf32>
    %17 = arith.maximumf %14, %16 : vector<16x8xf32>
    %18 = arith.truncf %17 : vector<16x8xf32> to vector<16x8xbf16>
    %c0_17 = arith.constant 0 : index
    %c8 = arith.constant 8 : index
    %19 = vector.load %arg4[%c0_17, %c8] : memref<16x64xbf16, #tpu.memory_space<vmem>>, vector<16x8xbf16>
    tpu.vector_store %arg4[%c0_17, %c8], %18 {strides = array<i32>} : memref<16x64xbf16, #tpu.memory_space<vmem>>, vector<16x8xbf16>,
    %c0_18 = arith.constant 0 : index
    %c64 = arith.constant 64 : index
    %20 = vector.load %arg1[%c0_18, %c64] : memref<16x256xbf16, #tpu.memory_space<vmem>>, vector<16x16xbf16>
    %c0_19 = arith.constant 0 : index
    %c80 = arith.constant 80 : index
    %21 = vector.load %arg1[%c0_19, %c80] : memref<16x256xbf16, #tpu.memory_space<vmem>>, vector<16x16xbf16>
    %22 = arith.maximumf %20, %21 : vector<16x16xbf16>
    %c0_20 = arith.constant 0 : index
    %c0_21 = arith.constant 0 : index
    %23 = vector.load %arg2[%c0_20, %c0_21] : memref<16x8xbf16, #tpu.memory_space<vmem>>, vector<16x8xbf16>
    %cst_22 = arith.constant dense<0.000000e+00> : vector<16x8xf32>
    %24 = tpu.matmul %22, %23, %cst_22 {dimension_numbers = #tpu.dot_dimension_numbers<[1], [0], [0], [1], [0, 0, 1, 1], [], []>} : vector<16x16xbf16>, vector<16x8xbf16>, vector<16x8xf32> -> vector<16x8xf32>
    %c0_23 = arith.constant 0 : index
    %c0_24 = arith.constant 0 : index
    %25 = vector.load %arg3[%c0_23, %c0_24] : memref<16x8xbf16, #tpu.memory_space<vmem>>, vector<16x8xbf16>
    %cst_25 = arith.constant dense<0.000000e+00> : vector<16x8xf32>
    %26 = tpu.matmul %22, %25, %cst_25 {dimension_numbers = #tpu.dot_dimension_numbers<[1], [0], [0], [1], [0, 0, 1, 1], [], []>} : vector<16x16xbf16>, vector<16x8xbf16>, vector<16x8xf32> -> vector<16x8xf32>
    %27 = arith.maximumf %24, %26 : vector<16x8xf32>
    %28 = arith.truncf %27 : vector<16x8xf32> to vector<16x8xbf16>
    %c0_26 = arith.constant 0 : index
    %c16_27 = arith.constant 16 : index
    %29 = vector.load %arg4[%c0_26, %c16_27] : memref<16x64xbf16, #tpu.memory_space<vmem>>, vector<16x8xbf16>
    tpu.vector_store %arg4[%c0_26, %c16_27], %28 {strides = array<i32>} : memref<16x64xbf16, #tpu.memory_space<vmem>>, vector<16x8xbf16>,
    %c0_28 = arith.constant 0 : index
    %c96 = arith.constant 96 : index
    %30 = vector.load %arg1[%c0_28, %c96] : memref<16x256xbf16, #tpu.memory_space<vmem>>, vector<16x16xbf16>
    %c0_29 = arith.constant 0 : index
    %c112 = arith.constant 112 : index
    %31 = vector.load %arg1[%c0_29, %c112] : memref<16x256xbf16, #tpu.memory_space<vmem>>, vector<16x16xbf16>
    %32 = arith.maximumf %30, %31 : vector<16x16xbf16>
    %c0_30 = arith.constant 0 : index
    %c0_31 = arith.constant 0 : index
    %33 = vector.load %arg2[%c0_30, %c0_31] : memref<16x8xbf16, #tpu.memory_space<vmem>>, vector<16x8xbf16>
    %cst_32 = arith.constant dense<0.000000e+00> : vector<16x8xf32>
    %34 = tpu.matmul %32, %33, %cst_32 {dimension_numbers = #tpu.dot_dimension_numbers<[1], [0], [0], [1], [0, 0, 1, 1], [], []>} : vector<16x16xbf16>, vector<16x8xbf16>, vector<16x8xf32> -> vector<16x8xf32>
    %c0_33 = arith.constant 0 : index
    %c0_34 = arith.constant 0 : index
    %35 = vector.load %arg3[%c0_33, %c0_34] : memref<16x8xbf16, #tpu.memory_space<vmem>>, vector<16x8xbf16>
    %cst_35 = arith.constant dense<0.000000e+00> : vector<16x8xf32>
    %36 = tpu.matmul %32, %35, %cst_35 {dimension_numbers = #tpu.dot_dimension_numbers<[1], [0], [0], [1], [0, 0, 1, 1], [], []>} : vector<16x16xbf16>, vector<16x8xbf16>, vector<16x8xf32> -> vector<16x8xf32>
    %37 = arith.maximumf %34, %36 : vector<16x8xf32>
    %38 = arith.truncf %37 : vector<16x8xf32> to vector<16x8xbf16>
    %c0_36 = arith.constant 0 : index
    %c24 = arith.constant 24 : index
    %39 = vector.load %arg4[%c0_36, %c24] : memref<16x64xbf16, #tpu.memory_space<vmem>>, vector<16x8xbf16>
    tpu.vector_store %arg4[%c0_36, %c24], %38 {strides = array<i32>} : memref<16x64xbf16, #tpu.memory_space<vmem>>, vector<16x8xbf16>,
    %c0_37 = arith.constant 0 : index
    %c128 = arith.constant 128 : index
    %40 = vector.load %arg1[%c0_37, %c128] : memref<16x256xbf16, #tpu.memory_space<vmem>>, vector<16x16xbf16>
    %c0_38 = arith.constant 0 : index
    %c144 = arith.constant 144 : index
    %41 = vector.load %arg1[%c0_38, %c144] : memref<16x256xbf16, #tpu.memory_space<vmem>>, vector<16x16xbf16>
    %42 = arith.maximumf %40, %41 : vector<16x16xbf16>
    %c0_39 = arith.constant 0 : index
    %c0_40 = arith.constant 0 : index
    %43 = vector.load %arg2[%c0_39, %c0_40] : memref<16x8xbf16, #tpu.memory_space<vmem>>, vector<16x8xbf16>
    %cst_41 = arith.constant dense<0.000000e+00> : vector<16x8xf32>
    %44 = tpu.matmul %42, %43, %cst_41 {dimension_numbers = #tpu.dot_dimension_numbers<[1], [0], [0], [1], [0, 0, 1, 1], [], []>} : vector<16x16xbf16>, vector<16x8xbf16>, vector<16x8xf32> -> vector<16x8xf32>
    %c0_42 = arith.constant 0 : index
    %c0_43 = arith.constant 0 : index
    %45 = vector.load %arg3[%c0_42, %c0_43] : memref<16x8xbf16, #tpu.memory_space<vmem>>, vector<16x8xbf16>
    %cst_44 = arith.constant dense<0.000000e+00> : vector<16x8xf32>
    %46 = tpu.matmul %42, %45, %cst_44 {dimension_numbers = #tpu.dot_dimension_numbers<[1], [0], [0], [1], [0, 0, 1, 1], [], []>} : vector<16x16xbf16>, vector<16x8xbf16>, vector<16x8xf32> -> vector<16x8xf32>
    %47 = arith.maximumf %44, %46 : vector<16x8xf32>
    %48 = arith.truncf %47 : vector<16x8xf32> to vector<16x8xbf16>
    %c0_45 = arith.constant 0 : index
    %c32_46 = arith.constant 32 : index
    %49 = vector.load %arg4[%c0_45, %c32_46] : memref<16x64xbf16, #tpu.memory_space<vmem>>, vector<16x8xbf16>
    tpu.vector_store %arg4[%c0_45, %c32_46], %48 {strides = array<i32>} : memref<16x64xbf16, #tpu.memory_space<vmem>>, vector<16x8xbf16>,
    %c0_47 = arith.constant 0 : index
    %c160 = arith.constant 160 : index
    %50 = vector.load %arg1[%c0_47, %c160] : memref<16x256xbf16, #tpu.memory_space<vmem>>, vector<16x16xbf16>
    %c0_48 = arith.constant 0 : index
    %c176 = arith.constant 176 : index
    %51 = vector.load %arg1[%c0_48, %c176] : memref<16x256xbf16, #tpu.memory_space<vmem>>, vector<16x16xbf16>
    %52 = arith.maximumf %50, %51 : vector<16x16xbf16>
    %c0_49 = arith.constant 0 : index
    %c0_50 = arith.constant 0 : index
    %53 = vector.load %arg2[%c0_49, %c0_50] : memref<16x8xbf16, #tpu.memory_space<vmem>>, vector<16x8xbf16>
    %cst_51 = arith.constant dense<0.000000e+00> : vector<16x8xf32>
    %54 = tpu.matmul %52, %53, %cst_51 {dimension_numbers = #tpu.dot_dimension_numbers<[1], [0], [0], [1], [0, 0, 1, 1], [], []>} : vector<16x16xbf16>, vector<16x8xbf16>, vector<16x8xf32> -> vector<16x8xf32>
    %c0_52 = arith.constant 0 : index
    %c0_53 = arith.constant 0 : index
    %55 = vector.load %arg3[%c0_52, %c0_53] : memref<16x8xbf16, #tpu.memory_space<vmem>>, vector<16x8xbf16>
    %cst_54 = arith.constant dense<0.000000e+00> : vector<16x8xf32>
    %56 = tpu.matmul %52, %55, %cst_54 {dimension_numbers = #tpu.dot_dimension_numbers<[1], [0], [0], [1], [0, 0, 1, 1], [], []>} : vector<16x16xbf16>, vector<16x8xbf16>, vector<16x8xf32> -> vector<16x8xf32>
    %57 = arith.maximumf %54, %56 : vector<16x8xf32>
    %58 = arith.truncf %57 : vector<16x8xf32> to vector<16x8xbf16>
    %c0_55 = arith.constant 0 : index
    %c40 = arith.constant 40 : index
    %59 = vector.load %arg4[%c0_55, %c40] : memref<16x64xbf16, #tpu.memory_space<vmem>>, vector<16x8xbf16>
    tpu.vector_store %arg4[%c0_55, %c40], %58 {strides = array<i32>} : memref<16x64xbf16, #tpu.memory_space<vmem>>, vector<16x8xbf16>,
    %c0_56 = arith.constant 0 : index
    %c192 = arith.constant 192 : index
    %60 = vector.load %arg1[%c0_56, %c192] : memref<16x256xbf16, #tpu.memory_space<vmem>>, vector<16x16xbf16>
    %c0_57 = arith.constant 0 : index
    %c208 = arith.constant 208 : index
    %61 = vector.load %arg1[%c0_57, %c208] : memref<16x256xbf16, #tpu.memory_space<vmem>>, vector<16x16xbf16>
    %62 = arith.maximumf %60, %61 : vector<16x16xbf16>
    %c0_58 = arith.constant 0 : index
    %c0_59 = arith.constant 0 : index
    %63 = vector.load %arg2[%c0_58, %c0_59] : memref<16x8xbf16, #tpu.memory_space<vmem>>, vector<16x8xbf16>
    %cst_60 = arith.constant dense<0.000000e+00> : vector<16x8xf32>
    %64 = tpu.matmul %62, %63, %cst_60 {dimension_numbers = #tpu.dot_dimension_numbers<[1], [0], [0], [1], [0, 0, 1, 1], [], []>} : vector<16x16xbf16>, vector<16x8xbf16>, vector<16x8xf32> -> vector<16x8xf32>
    %c0_61 = arith.constant 0 : index
    %c0_62 = arith.constant 0 : index
    %65 = vector.load %arg3[%c0_61, %c0_62] : memref<16x8xbf16, #tpu.memory_space<vmem>>, vector<16x8xbf16>
    %cst_63 = arith.constant dense<0.000000e+00> : vector<16x8xf32>
    %66 = tpu.matmul %62, %65, %cst_63 {dimension_numbers = #tpu.dot_dimension_numbers<[1], [0], [0], [1], [0, 0, 1, 1], [], []>} : vector<16x16xbf16>, vector<16x8xbf16>, vector<16x8xf32> -> vector<16x8xf32>
    %67 = arith.maximumf %64, %66 : vector<16x8xf32>
    %68 = arith.truncf %67 : vector<16x8xf32> to vector<16x8xbf16>
    %c0_64 = arith.constant 0 : index
    %c48_65 = arith.constant 48 : index
    %69 = vector.load %arg4[%c0_64, %c48_65] : memref<16x64xbf16, #tpu.memory_space<vmem>>, vector<16x8xbf16>
    tpu.vector_store %arg4[%c0_64, %c48_65], %68 {strides = array<i32>} : memref<16x64xbf16, #tpu.memory_space<vmem>>, vector<16x8xbf16>,
    %c0_66 = arith.constant 0 : index
    %c224 = arith.constant 224 : index
    %70 = vector.load %arg1[%c0_66, %c224] : memref<16x256xbf16, #tpu.memory_space<vmem>>, vector<16x16xbf16>
    %c0_67 = arith.constant 0 : index
    %c240 = arith.constant 240 : index
    %71 = vector.load %arg1[%c0_67, %c240] : memref<16x256xbf16, #tpu.memory_space<vmem>>, vector<16x16xbf16>
    %72 = arith.maximumf %70, %71 : vector<16x16xbf16>
    %c0_68 = arith.constant 0 : index
    %c0_69 = arith.constant 0 : index
    %73 = vector.load %arg2[%c0_68, %c0_69] : memref<16x8xbf16, #tpu.memory_space<vmem>>, vector<16x8xbf16>
    %cst_70 = arith.constant dense<0.000000e+00> : vector<16x8xf32>
    %74 = tpu.matmul %72, %73, %cst_70 {dimension_numbers = #tpu.dot_dimension_numbers<[1], [0], [0], [1], [0, 0, 1, 1], [], []>} : vector<16x16xbf16>, vector<16x8xbf16>, vector<16x8xf32> -> vector<16x8xf32>
    %c0_71 = arith.constant 0 : index
    %c0_72 = arith.constant 0 : index
    %75 = vector.load %arg3[%c0_71, %c0_72] : memref<16x8xbf16, #tpu.memory_space<vmem>>, vector<16x8xbf16>
    %cst_73 = arith.constant dense<0.000000e+00> : vector<16x8xf32>
    %76 = tpu.matmul %72, %75, %cst_73 {dimension_numbers = #tpu.dot_dimension_numbers<[1], [0], [0], [1], [0, 0, 1, 1], [], []>} : vector<16x16xbf16>, vector<16x8xbf16>, vector<16x8xf32> -> vector<16x8xf32>
    %77 = arith.maximumf %74, %76 : vector<16x8xf32>
    %78 = arith.truncf %77 : vector<16x8xf32> to vector<16x8xbf16>
    %c0_74 = arith.constant 0 : index
    %c56 = arith.constant 56 : index
    %79 = vector.load %arg4[%c0_74, %c56] : memref<16x64xbf16, #tpu.memory_space<vmem>>, vector<16x8xbf16>
    tpu.vector_store %arg4[%c0_74, %c56], %78 {strides = array<i32>} : memref<16x64xbf16, #tpu.memory_space<vmem>>, vector<16x8xbf16>,
    return
  }
  func.func @transform_0(%arg0: i32) -> (i32, i32) {
    %c0_i32 = arith.constant 0 : i32
    %c0_i32_0 = arith.constant 0 : i32
    return %arg0, %c0_i32 : i32, i32
  }
  func.func @transform_1(%arg0: i32) -> (i32, i32) {
    %c0_i32 = arith.constant 0 : i32
    %c0_i32_0 = arith.constant 0 : i32
    %c0_i32_1 = arith.constant 0 : i32
    return %c0_i32, %c0_i32_0 : i32, i32
  }
  func.func @transform_2(%arg0: i32) -> (i32, i32) {
    %c0_i32 = arith.constant 0 : i32
    %c0_i32_0 = arith.constant 0 : i32
    %c0_i32_1 = arith.constant 0 : i32
    return %c0_i32, %c0_i32_0 : i32, i32
  }
  func.func @transform_3(%arg0: i32) -> (i32, i32) {
    %c0_i32 = arith.constant 0 : i32
    %c0_i32_0 = arith.constant 0 : i32
    return %arg0, %c0_i32 : i32, i32
  }
}

module attributes {stable_mosaic.version = 11 : i64} {
  func.func @kernel(%arg0: i32, %arg1: memref<16x128xbf16, #tpu.memory_space<vmem>>, %arg2: memref<24x16xbf16, #tpu.memory_space<vmem>>, %arg3: memref<24x1xf32, #tpu.memory_space<vmem>>, %arg4: memref<24x4xf32, #tpu.memory_space<vmem>>, %arg5: memref<24x128xf32, #tpu.memory_space<vmem>>, %arg6: memref<24x128xf32, #tpu.memory_space<vmem>>) attributes {dimension_semantics = [#tpu.dimension_semantics<parallel>], iteration_bounds = array<i64: 1>, scalar_prefetch = 0 : i64, scratch_operands = 0 : i64, tpu.core_type = #tpu.core_type<tc>, window_params = [{transform_indices = @transform_0, window_bounds = array<i64: 16, 128>}, {pipeline_mode = #tpu.pipeline_mode<synchronous>, transform_indices = @transform_1, window_bounds = array<i64: 24, 16>}, {pipeline_mode = #tpu.pipeline_mode<synchronous>, transform_indices = @transform_2, window_bounds = array<i64: 24, 1>}, {pipeline_mode = #tpu.pipeline_mode<synchronous>, transform_indices = @transform_3, window_bounds = array<i64: 24, 4>}, {transform_indices = @transform_4, window_bounds = array<i64: 24, 128>}, {transform_indices = @transform_5, window_bounds = array<i64: 24, 128>}]} {
    %c0 = arith.constant 0 : index
    %c0_0 = arith.constant 0 : index
    %0 = vector.load %arg2[%c0, %c0_0] : memref<24x16xbf16, #tpu.memory_space<vmem>>, vector<24x16xbf16>
    %c0_1 = arith.constant 0 : index
    %c0_2 = arith.constant 0 : index
    %1 = vector.load %arg1[%c0_1, %c0_2] : memref<16x128xbf16, #tpu.memory_space<vmem>>, vector<16x128xbf16>
    %cst = arith.constant dense<0.000000e+00> : vector<24x128xf32>
    %2 = tpu.matmul %0, %1, %cst {dimension_numbers = #tpu.dot_dimension_numbers<[1], [0], [0], [1], [0, 0, 1, 1], [], []>} : vector<24x16xbf16>, vector<16x128xbf16>, vector<24x128xf32> -> vector<24x128xf32>
    %c0_3 = arith.constant 0 : index
    %c0_4 = arith.constant 0 : index
    %3 = vector.load %arg3[%c0_3, %c0_4] : memref<24x1xf32, #tpu.memory_space<vmem>>, vector<24x1xf32>
    %4 = vector.broadcast %3 : vector<24x1xf32> to vector<24x128xf32>
    %5 = arith.addf %2, %4 : vector<24x128xf32>
    %c0_5 = arith.constant 0 : index
    %c0_6 = arith.constant 0 : index
    %6 = vector.load %arg5[%c0_5, %c0_6] : memref<24x128xf32, #tpu.memory_space<vmem>>, vector<24x128xf32>
    tpu.vector_store %arg5[%c0_5, %c0_6], %5 {strides = array<i32>} : memref<24x128xf32, #tpu.memory_space<vmem>>, vector<24x128xf32>,
    %c0_7 = arith.constant 0 : index
    %c0_8 = arith.constant 0 : index
    %7 = vector.load %arg4[%c0_7, %c0_8] : memref<24x4xf32, #tpu.memory_space<vmem>>, vector<24x1xf32>
    %c0_9 = arith.constant 0 : index
    %c1 = arith.constant 1 : index
    %8 = vector.load %arg4[%c0_9, %c1] : memref<24x4xf32, #tpu.memory_space<vmem>>, vector<24x1xf32>
    %c0_10 = arith.constant 0 : index
    %c2 = arith.constant 2 : index
    %9 = vector.load %arg4[%c0_10, %c2] : memref<24x4xf32, #tpu.memory_space<vmem>>, vector<24x1xf32>
    %c0_11 = arith.constant 0 : index
    %c3 = arith.constant 3 : index
    %10 = vector.load %arg4[%c0_11, %c3] : memref<24x4xf32, #tpu.memory_space<vmem>>, vector<24x1xf32>
    %11 = arith.addf %7, %8 : vector<24x1xf32>
    %c128_i32 = arith.constant 128 : i32
    %12 = arith.muli %arg0, %c128_i32 : i32
    %13 = arith.sitofp %12 : i32 to f32
    %14 = tpu.iota {dimensions = array<i32: 1>} : vector<1x128xi32>
    %15 = arith.sitofp %14 : vector<1x128xi32> to vector<1x128xf32>
    %16 = vector.broadcast %13 : f32 to vector<1x128xf32>
    %17 = arith.addf %15, %16 : vector<1x128xf32>
    %cst_12 = arith.constant 5.000000e-01 : f32
    %18 = vector.broadcast %cst_12 : f32 to vector<1x128xf32>
    %19 = arith.addf %17, %18 : vector<1x128xf32>
    %cst_13 = arith.constant 8.000000e+00 : f32
    %20 = vector.broadcast %cst_13 : f32 to vector<1x128xf32>
    %21 = arith.divf %19, %20 : vector<1x128xf32>
    %22 = math.floor %21 : vector<1x128xf32>
    %cst_14 = arith.constant 8.000000e+00 : f32
    %23 = vector.broadcast %cst_14 : f32 to vector<1x128xf32>
    %24 = arith.mulf %22, %23 : vector<1x128xf32>
    %25 = arith.subf %17, %24 : vector<1x128xf32>
    %cst_15 = arith.constant 5.000000e-01 : f32
    %26 = vector.broadcast %cst_15 : f32 to vector<1x128xf32>
    %27 = arith.addf %22, %26 : vector<1x128xf32>
    %cst_16 = arith.constant 8.000000e+00 : f32
    %28 = vector.broadcast %cst_16 : f32 to vector<1x128xf32>
    %29 = arith.divf %27, %28 : vector<1x128xf32>
    %30 = math.floor %29 : vector<1x128xf32>
    %cst_17 = arith.constant 8.000000e+00 : f32
    %31 = vector.broadcast %cst_17 : f32 to vector<1x128xf32>
    %32 = arith.mulf %30, %31 : vector<1x128xf32>
    %33 = arith.subf %22, %32 : vector<1x128xf32>
    %cst_18 = arith.constant 0.000000e+00 : f32
    %34 = vector.broadcast %cst_18 : f32 to vector<24x128xf32>
    %35 = arith.subf %34, %5 : vector<24x128xf32>
    %36 = math.exp %35 : vector<24x128xf32>
    %cst_19 = arith.constant 1.000000e+00 : f32
    %37 = vector.broadcast %cst_19 : f32 to vector<24x128xf32>
    %38 = arith.addf %37, %36 : vector<24x128xf32>
    %cst_20 = arith.constant 1.000000e+00 : f32
    %39 = vector.broadcast %cst_20 : f32 to vector<24x128xf32>
    %40 = arith.divf %39, %38 : vector<24x128xf32>
    %41 = vector.broadcast %7 : vector<24x1xf32> to vector<24x128xf32>
    %42 = vector.broadcast %25 : vector<1x128xf32> to vector<24x128xf32>
    %43 = arith.mulf %41, %42 : vector<24x128xf32>
    %44 = arith.addf %40, %43 : vector<24x128xf32>
    %45 = vector.broadcast %8 : vector<24x1xf32> to vector<24x128xf32>
    %46 = vector.broadcast %33 : vector<1x128xf32> to vector<24x128xf32>
    %47 = arith.mulf %45, %46 : vector<24x128xf32>
    %48 = arith.addf %44, %47 : vector<24x128xf32>
    %cst_21 = arith.constant 3.200000e+01 : f32
    %49 = vector.broadcast %cst_21 : f32 to vector<24x128xf32>
    %50 = arith.mulf %48, %49 : vector<24x128xf32>
    %51 = vector.broadcast %9 : vector<24x1xf32> to vector<24x128xf32>
    %52 = arith.mulf %5, %51 : vector<24x128xf32>
    %53 = math.exp %52 : vector<24x128xf32>
    %54 = vector.broadcast %10 : vector<24x1xf32> to vector<24x128xf32>
    %55 = arith.mulf %53, %54 : vector<24x128xf32>
    %56 = vector.broadcast %11 : vector<24x1xf32> to vector<24x128xf32>
    %57 = arith.mulf %56, %50 : vector<24x128xf32>
    %58 = vector.broadcast %9 : vector<24x1xf32> to vector<24x128xf32>
    %59 = arith.mulf %58, %55 : vector<24x128xf32>
    %60 = arith.addf %57, %59 : vector<24x128xf32>
    %cst_22 = arith.constant 1.000000e+00 : f32
    %61 = vector.broadcast %cst_22 : f32 to vector<24x1xf32>
    %62 = arith.subf %61, %11 : vector<24x1xf32>
    %63 = arith.subf %62, %9 : vector<24x1xf32>
    %64 = vector.broadcast %63 : vector<24x1xf32> to vector<24x128xf32>
    %65 = arith.mulf %64, %40 : vector<24x128xf32>
    %66 = arith.addf %60, %65 : vector<24x128xf32>
    %c0_23 = arith.constant 0 : index
    %c0_24 = arith.constant 0 : index
    %67 = vector.load %arg6[%c0_23, %c0_24] : memref<24x128xf32, #tpu.memory_space<vmem>>, vector<24x128xf32>
    tpu.vector_store %arg6[%c0_23, %c0_24], %66 {strides = array<i32>} : memref<24x128xf32, #tpu.memory_space<vmem>>, vector<24x128xf32>,
    return
  }
  func.func @transform_0(%arg0: i32) -> (i32, i32) {
    %c0_i32 = arith.constant 0 : i32
    %c0_i32_0 = arith.constant 0 : i32
    return %c0_i32, %arg0 : i32, i32
  }
  func.func @transform_1(%arg0: i32) -> (i32, i32) {
    %c0_i32 = arith.constant 0 : i32
    %c0_i32_0 = arith.constant 0 : i32
    %c0_i32_1 = arith.constant 0 : i32
    return %c0_i32, %c0_i32_0 : i32, i32
  }
  func.func @transform_2(%arg0: i32) -> (i32, i32) {
    %c0_i32 = arith.constant 0 : i32
    %c0_i32_0 = arith.constant 0 : i32
    %c0_i32_1 = arith.constant 0 : i32
    return %c0_i32, %c0_i32_0 : i32, i32
  }
  func.func @transform_3(%arg0: i32) -> (i32, i32) {
    %c0_i32 = arith.constant 0 : i32
    %c0_i32_0 = arith.constant 0 : i32
    %c0_i32_1 = arith.constant 0 : i32
    return %c0_i32, %c0_i32_0 : i32, i32
  }
  func.func @transform_4(%arg0: i32) -> (i32, i32) {
    %c0_i32 = arith.constant 0 : i32
    %c0_i32_0 = arith.constant 0 : i32
    return %c0_i32, %arg0 : i32, i32
  }
  func.func @transform_5(%arg0: i32) -> (i32, i32) {
    %c0_i32 = arith.constant 0 : i32
    %c0_i32_0 = arith.constant 0 : i32
    return %c0_i32, %arg0 : i32, i32
  }
}

module attributes {stable_mosaic.version = 11 : i64} {
  func.func @_conv_leaky_kernel(%arg0: i32, %arg1: memref<80x128xbf16, #tpu.memory_space<vmem>>, %arg2: memref<16x80xbf16, #tpu.memory_space<vmem>>, %arg3: memref<16x1xf32, #tpu.memory_space<vmem>>, %arg4: memref<16x128xbf16, #tpu.memory_space<vmem>>) attributes {dimension_semantics = [#tpu.dimension_semantics<parallel>], iteration_bounds = array<i64: 1>, scalar_prefetch = 0 : i64, scratch_operands = 0 : i64, tpu.core_type = #tpu.core_type<tc>, window_params = [{transform_indices = @transform_0, window_bounds = array<i64: 80, 128>}, {pipeline_mode = #tpu.pipeline_mode<synchronous>, transform_indices = @transform_1, window_bounds = array<i64: 16, 80>}, {pipeline_mode = #tpu.pipeline_mode<synchronous>, transform_indices = @transform_2, window_bounds = array<i64: 16, 1>}, {transform_indices = @transform_3, window_bounds = array<i64: 16, 128>}]} {
    %c0 = arith.constant 0 : index
    %c0_0 = arith.constant 0 : index
    %0 = vector.load %arg2[%c0, %c0_0] : memref<16x80xbf16, #tpu.memory_space<vmem>>, vector<16x80xbf16>
    %c0_1 = arith.constant 0 : index
    %c0_2 = arith.constant 0 : index
    %1 = vector.load %arg1[%c0_1, %c0_2] : memref<80x128xbf16, #tpu.memory_space<vmem>>, vector<80x128xbf16>
    %cst = arith.constant dense<0.000000e+00> : vector<16x128xf32>
    %2 = tpu.matmul %0, %1, %cst {dimension_numbers = #tpu.dot_dimension_numbers<[1], [0], [0], [1], [0, 0, 1, 1], [], []>} : vector<16x80xbf16>, vector<80x128xbf16>, vector<16x128xf32> -> vector<16x128xf32>
    %c0_3 = arith.constant 0 : index
    %c0_4 = arith.constant 0 : index
    %3 = vector.load %arg3[%c0_3, %c0_4] : memref<16x1xf32, #tpu.memory_space<vmem>>, vector<16x1xf32>
    %4 = vector.broadcast %3 : vector<16x1xf32> to vector<16x128xf32>
    %5 = arith.addf %2, %4 : vector<16x128xf32>
    %cst_5 = arith.constant 1.000000e-01 : f32
    %6 = vector.broadcast %cst_5 : f32 to vector<16x128xf32>
    %7 = arith.mulf %6, %5 : vector<16x128xf32>
    %8 = arith.maximumf %5, %7 : vector<16x128xf32>
    %9 = arith.truncf %8 : vector<16x128xf32> to vector<16x128xbf16>
    %c0_6 = arith.constant 0 : index
    %c0_7 = arith.constant 0 : index
    %10 = vector.load %arg4[%c0_6, %c0_7] : memref<16x128xbf16, #tpu.memory_space<vmem>>, vector<16x128xbf16>
    tpu.vector_store %arg4[%c0_6, %c0_7], %9 {strides = array<i32>} : memref<16x128xbf16, #tpu.memory_space<vmem>>, vector<16x128xbf16>,
    return
  }
  func.func @transform_0(%arg0: i32) -> (i32, i32) {
    %c0_i32 = arith.constant 0 : i32
    %c0_i32_0 = arith.constant 0 : i32
    return %c0_i32, %arg0 : i32, i32
  }
  func.func @transform_1(%arg0: i32) -> (i32, i32) {
    %c0_i32 = arith.constant 0 : i32
    %c0_i32_0 = arith.constant 0 : i32
    %c0_i32_1 = arith.constant 0 : i32
    return %c0_i32, %c0_i32_0 : i32, i32
  }
  func.func @transform_2(%arg0: i32) -> (i32, i32) {
    %c0_i32 = arith.constant 0 : i32
    %c0_i32_0 = arith.constant 0 : i32
    %c0_i32_1 = arith.constant 0 : i32
    return %c0_i32, %c0_i32_0 : i32, i32
  }
  func.func @transform_3(%arg0: i32) -> (i32, i32) {
    %c0_i32 = arith.constant 0 : i32
    %c0_i32_0 = arith.constant 0 : i32
    return %c0_i32, %arg0 : i32, i32
  }
}

</mosaic_0001>

<bundles_post_ra>
// kernel: darknet2_forward.4
= control target key start
LH: loop header
LB: loop body
LE: loop exit
PB: predicated region body
PF: predicated region fallthrough
CT: control target
= control target key end

     0   :  { %v188_v3 = vmov 0   ;;  %vm70_vm0 = vcmask 261120   ;;  %s269_s0 = inlined_call_operand.vmem [shape: bf16[32,512], index: 0, kind: input, shape index: {}]   ;;  %s270_s2 = inlined_call_operand.vmem [shape: f32[8,1], index: 2, kind: input, shape index: {}]   ;;  %s271_s1 = inlined_call_operand.vmem [shape: bf16[8,32], index: 1, kind: input, shape index: {}]   ;;  %s272_s3 = inlined_call_operand.vmem [shape: bf16[8,512], index: 3, kind: output, shape index: {}]  }
   0x1   :  { %v160_v0 = vld [vmem:[%s269_s0 + $0x20] sm:$0xf]  ;;  %v184_v1 = vld [vmem:[%s269_s0 + $0x2c] sm:$0xf0]  ;;  %v182_v2 = vld [vmem:[%s269_s0 + $0x24] sm:$0xf]  ;;  %187 = vset.pattern.permute.xlu0 %v188_v3 }
   0x2   :  { %v161_v4 = vor.u32 %v184_v1, %v160_v0  ;;  %v162_v5 = vld [vmem:[%s269_s0 + $0x30] sm:$0xf0]  ;;  %v168_v6 = vld [vmem:[%s269_s0 + $0x28] sm:$0xf]  ;;  %v185_v7 = vld [vmem:[%s269_s0 + $0x34] sm:$0xf0] }
   0x3   :  { %v165_v8 = vor.u32 %v182_v2, %v162_v5  ;;  %v169_v9 = vor.u32 %v185_v7, %v168_v6  ;;  %v183_v10 = vld [vmem:[%s269_s0 + $0x2c] sm:$0xf]  ;;  %v170_v11 = vld [vmem:[%s269_s0 + $0x38] sm:$0xf0]  ;;  %v144_v12 = vld [vmem:[%s269_s0] sm:$0xf] }
   0x4   :  { %80 = vmatpush.bf16.msra.mxu0 %v161_v4  ;;  %v173_v13 = vor.u32 %v183_v10, %v170_v11  ;;  %v180_v14 = vld [vmem:[%s269_s0 + $0xc] sm:$0xf0]  ;;  %v178_v15 = vld [vmem:[%s269_s0 + $0x4] sm:$0xf]  ;;  %v146_v16 = vld [vmem:[%s269_s0 + $0x10] sm:$0xf0] }
   0x5   :  { %93 = vmatpush.bf16.msra.mxu1 %v165_v8  ;;  %106 = vmatpush.bf16.msra.mxu2 %v169_v9  ;;  %v145_v17 = vor.u32 %v180_v14, %v144_v12  ;;  %v149_v18 = vor.u32 %v178_v15, %v146_v16  ;;  %v152_v19 = vld [vmem:[%s269_s0 + $0x8] sm:$0xf]  ;;  %v181_v20 = vld [vmem:[%s269_s0 + $0x14] sm:$0xf0]  ;;  %v179_v21 = vld [vmem:[%s269_s0 + $0xc] sm:$0xf] }
   0x6   :  { %119 = vmatpush.bf16.msra.mxu3 %v173_v13  ;;  %v153_v22 = vor.u32 %v181_v20, %v152_v19  ;;  %v154_v23 = vld [vmem:[%s269_s0 + $0x18] sm:$0xf0]  ;;  %v24_v24 = vld [vmem:[%s270_s2] sm:$0xff] }
   0x7   :  { %v157_v25 = vor.u32 %v179_v21, %v154_v23  ;;  %27 = vperm.xlu0 %187, %v24_v24   ;;  %v15_v26 = vld [vmem:[%s271_s1] sm:$0xf] }
   0x8   :  { %81 = vmatpush.bf16.msra.mxu0 %v145_v17 }
   0x9   :  { %94 = vmatpush.bf16.msra.mxu1 %v149_v18  ;;  %107 = vmatpush.bf16.msra.mxu2 %v153_v22 }
   0xa   :  { %120 = vmatpush.bf16.msra.mxu3 %v157_v25 }
   0xb   :  { %174 = vmatmul.msk.bf16.vlgmr.msra.gmra.mxu0 %vm70_vm0, %v15_v26 }
   0xc   :  { %175 = vmatmul.msk.bf16.vlgmr.msra.gmra.mxu1 %vm70_vm0, %v15_v26  ;;  %176 = vmatmul.msk.bf16.vlgmr.msra.gmra.mxu2 %vm70_vm0, %v15_v26 }
   0xd   :  { %177 = vmatmul.msk.bf16.vlgmr.msra.gmra.mxu3 %vm70_vm0, %v15_v26 }
  0x79   :  { %v28_v27 = vpop.permute.xlu0 %27 }
  0x88   :  { %v83_v28 = vpop.f32.mrf.mxu0 }
  0x89   :  { %v96_v29 = vpop.f32.mrf.mxu1  ;;  %v84_v30 = vadd.f32 %v83_v28, %v28_v27 }
  0x8a   :  { %v97_v31 = vadd.f32 %v96_v29, %v28_v27 }
  0x8b   :  { %v126_v32 = vmul.f32 0.1, %v84_v30 }
  0x8c   :  { %v127_v33 = vmul.f32 0.1, %v97_v31 }
  0x8d   :  { %v130_v34 = vmax.f32 %v84_v30, %v126_v32 }
  0x8e   :  { %v131_v35 = vmax.f32 %v97_v31, %v127_v33 }
  0x8f   :  { %v109_v36 = vpop.f32.mrf.mxu2 }
  0x90   :  { %v134_v37 = vpack.c.bf16 %v131_v35, %v130_v34  ;;  %v110_v38 = vadd.f32 %v109_v36, %v28_v27  ;;  %v122_v39 = vpop.f32.mrf.mxu3  ;;  %v85_v40 = vpop.f32.mrf.mxu0 }
  0x91   :  { %v123_v41 = vadd.f32 %v122_v39, %v28_v27  ;;  %v98_v42 = vpop.f32.mrf.mxu1 }
  0x92   :  { %v128_v43 = vmul.f32 0.1, %v110_v38  ;;  %136 = vst [vmem:[%s272_s3] sm:$0xff] %v134_v37 }
  0x93   :  { %v129_v44 = vmul.f32 0.1, %v123_v41 }
  0x94   :  { %v132_v45 = vmax.f32 %v110_v38, %v128_v43 }
  0x95   :  { %v133_v46 = vmax.f32 %v123_v41, %v129_v44 }
  0x97   :  { %v135_v47 = vpack.c.bf16 %v133_v46, %v132_v45  ;;  %v111_v48 = vpop.f32.mrf.mxu2 }
  0x98   :  { %v124_v49 = vpop.f32.mrf.mxu3 }
  0x99   :  { %137 = vst [vmem:[%s272_s3 + $0x8] sm:$0xff] %v135_v47 }

// kernel: darknet2_forward.5
= control target key start
LH: loop header
LB: loop body
LE: loop exit
PB: predicated region body
PF: predicated region fallthrough
CT: control target
= control target key end

     0   :  { %s792_s24 = smov 112   ;;  %s793_s6 = smov 96   ;;  %vm38_vm0 = vcmask 130048   ;;  %vm82_vm1 = vcmask 60416   ;;  %vm162_vm2 = vcmask 126016   ;;  %vm242_vm3 = vcmask 191616   ;;  %s1008_s0 = inlined_call_operand.vmem [shape: bf16[16,256], index: 0, kind: input, shape index: {}]   ;;  %s1009_s1 = inlined_call_operand.vmem [shape: bf16[16,8], index: 1, kind: input, shape index: {}]   ;;  %s1010_s2 = inlined_call_operand.vmem [shape: bf16[16,8], index: 2, kind: input, shape index: {}]   ;;  %s1011_s3 = inlined_call_operand.vmem [shape: bf16[16,64], index: 3, kind: output, shape index: {}]  }
   0x1   :  { %v825_v0 = vld [vmem:[%s1008_s0] sm:$0xff]   ;;  %v830_v1 = vld [vmem:[%s1008_s0 + $0x8] sm:$0xff]   ;;  %s794_s7 = smov 64   ;;  %s797_s12 = smov 24   ;;  %vm322_vm4 = vcmask 257216   ;;  %vm399_vm5 = vcmask 322816  }
   0x2   :  { %v835_v2 = vld [vmem:[%s1008_s0] sm:$0xff]   ;;  %v87_v3 = vunpack.c.l.bf16 %v825_v0  ;;  %v88_v4 = vunpack.c.l.bf16 %v830_v1  ;;  %v842_v5 = vld [vmem:[%s1008_s0 + $0x8] sm:$0xff]   ;;  %v404_v14 = vunpack.c.h.bf16 %v825_v0  ;;  %v405_v15 = vunpack.c.h.bf16 %v830_v1  ;;  %s798_s13 = smov 16   ;;  %s799_s14 = smov 40  }
   0x3   :  { %v167_v6 = vunpack.c.l.bf16 %v835_v2  ;;  %v168_v7 = vunpack.c.l.bf16 %v842_v5  ;;  %v849_v8 = vld [vmem:[%s1008_s0] sm:$0xff]   ;;  %v854_v9 = vld [vmem:[%s1008_s0 + $0x8] sm:$0xff]   ;;  %v564_v18 = vunpack.c.h.bf16 %v835_v2  ;;  %v565_v19 = vunpack.c.h.bf16 %v842_v5  ;;  %s800_s15 = smov 48   ;;  %s801_s16 = smov 56  }
   0x4   :  { %v752_v10 = vpack.i.bf16 %v88_v4, %v87_v3  ;;  %v247_v12 = vunpack.c.l.bf16 %v849_v8  ;;  %v248_v13 = vunpack.c.l.bf16 %v854_v9  ;;  %v767_v17 = vpack.i.bf16 %v405_v15, %v404_v14  ;;  %v728_v24 = vld [vmem:[%s1009_s1] sm:$0xff]  ;;  %v884_v37 = vld [vmem:[%s1008_s0 + $0x8] sm:$0xff]  }
   0x5   :  { %v762_v11 = vpack.i.bf16 %v168_v7, %v167_v6  ;;  %v484_v20 = vunpack.c.h.bf16 %v849_v8  ;;  %v485_v21 = vunpack.c.h.bf16 %v854_v9  ;;  %v777_v22 = vpack.i.bf16 %v565_v19, %v564_v18  ;;  %v729_v25 = vld [vmem:[%s1010_s2] sm:$0xff]  ;;  %121 = vmatpush.bf16.msra.mxu2 %v728_v24 }
   0x6   :  { %753 = vrot.lane.b32.xlu0 %v752_v10, %s792_s24  ;;  %v757_v16 = vpack.i.bf16 %v248_v13, %v247_v12  ;;  %143 = vmatpush.bf16.msra.mxu3 %v729_v25  ;;  %v879_v36 = vld [vmem:[%s1008_s0] sm:$0xff]   ;;  %v18_v41 = vunpack.c.l.bf16 %v884_v37  ;;  %s795_s0 = smov 32   ;;  %vm479_vm6 = vcmask 388416   ;;  %vm559_vm7 = vcmask 454016  }
   0x7   :  { %763 = vrot.lane.b32.xlu1 %v762_v11, %s792_s24  ;;  %v782_v23 = vpack.i.bf16 %v485_v21, %v484_v20  ;;  %v17_v40 = vunpack.c.l.bf16 %v879_v36  ;;  %v732_v8 = vld [vmem:[%s1009_s1] sm:$0xff]  ;;  %vm639_vm8 = vcmask 519616  }
   0x8   :  { %v733_v9 = vld [vmem:[%s1010_s2] sm:$0xff] }
   0x9   :  { %v772_v46 = vpack.i.bf16 %v18_v41, %v17_v40  ;;  %281 = vmatpush.bf16.msrb.mxu2 %v732_v8  ;;  %v730_v10 = vld [vmem:[%s1009_s1] sm:$0xff] }
   0xa   :  { %303 = vmatpush.bf16.msrb.mxu3 %v733_v9  ;;  %v731_v11 = vld [vmem:[%s1010_s2] sm:$0xff] }
   0xb   :  { %v741_v24 = vld [vmem:[%s1010_s2] sm:$0xff] }
   0xe   :  { %758 = vrot.lane.b32.xlu0 %v757_v16, %s792_s24 }
   0xf   :  { %768 = vrot.lane.b32.xlu1 %v767_v17, %s792_s24 }
  0x16   :  { %778 = vrot.lane.b32.xlu0 %v777_v22, %s792_s24 }
  0x17   :  { %783 = vrot.lane.b32.xlu1 %v782_v23, %s792_s24  ;;  %v740_v23 = vld [vmem:[%s1009_s1] sm:$0xff] }
  0x78   :  { %v754_v26 = vpop.permute.xlu0 %753 }
  0x79   :  { %v756_v27 = vunpack.i.h.bf16 %v754_v26  ;;  %v755_v28 = vunpack.i.l.bf16 %v754_v26  ;;  %v764_v29 = vpop.permute.xlu1 %763 }
  0x7a   :  { %v766_v30 = vunpack.i.h.bf16 %v764_v29  ;;  %v765_v31 = vunpack.i.l.bf16 %v764_v29 }
  0x7b   :  { %v97_v32 = vmax.f32 %v87_v3, %v755_v28  ;;  %v98_v33 = vmax.f32 %v88_v4, %v756_v27  ;;  %v327_v3 = vunpack.c.h.bf16 %v879_v36  ;;  %v328_v4 = vunpack.c.h.bf16 %v884_v37  ;;  %v738_v27 = vld [vmem:[%s1009_s1] sm:$0xff] }
  0x7c   :  { %v178_v34 = vmax.f32 %v168_v7, %v766_v30  ;;  %v177_v35 = vmax.f32 %v167_v6, %v765_v31  ;;  %v726_v6 = vld [vmem:[%s1009_s1] sm:$0xff] }
  0x7d   :  { %v99_v38 = vpack.c.bf16 %v98_v33, %v97_v32  ;;  %v787_v5 = vpack.i.bf16 %v328_v4, %v327_v3  ;;  %v727_v7 = vld [vmem:[%s1010_s2] sm:$0xff]  ;;  %49 = vmatpush.bf16.msra.mxu0 %v726_v6 }
  0x7e   :  { %v179_v39 = vpack.c.bf16 %v178_v34, %v177_v35  ;;  %71 = vmatpush.bf16.msra.mxu1 %v727_v7  ;;  %v739_v28 = vld [vmem:[%s1010_s2] sm:$0xff] }
  0x7f   :  { %103 = vrot.lane.b32.xlu2 %v99_v38, %s793_s6 }
  0x80   :  { %183 = vrot.lane.b32.xlu0 %v179_v39, %s794_s7  ;;  %v759_v42 = vpop.permute.xlu0 %758 }
  0x81   :  { %v769_v43 = vpop.permute.xlu1 %768  ;;  %v761_v47 = vunpack.i.h.bf16 %v759_v42  ;;  %v760_v48 = vunpack.i.l.bf16 %v759_v42  ;;  %201 = vmatpush.bf16.msrb.mxu0 %v730_v10 }
  0x82   :  { %v771_v44 = vunpack.i.h.bf16 %v769_v43  ;;  %v770_v45 = vunpack.i.l.bf16 %v769_v43  ;;  %223 = vmatpush.bf16.msrb.mxu1 %v731_v11 }
  0x83   :  { %v258_v52 = vmax.f32 %v248_v13, %v761_v47  ;;  %v257_v53 = vmax.f32 %v247_v12, %v760_v48  ;;  %v736_v12 = vld [vmem:[%s1009_s1] sm:$0xff] }
  0x84   :  { %v415_v49 = vmax.f32 %v405_v15, %v771_v44  ;;  %v414_v50 = vmax.f32 %v404_v14, %v770_v45  ;;  %v737_v13 = vld [vmem:[%s1010_s2] sm:$0xff] }
  0x85   :  { %v259_v60 = vpack.c.bf16 %v258_v52, %v257_v53 }
  0x86   :  { %v416_v51 = vpack.c.bf16 %v415_v49, %v414_v50 }
  0x87   :  { %773 = vrot.lane.b32.xlu2 %v772_v46, %s792_s24 }
  0x88   :  { %420 = vrot.lane.b32.xlu1 %v416_v51, %s793_s6  ;;  %v779_v54 = vpop.permute.xlu0 %778 }
  0x89   :  { %v781_v55 = vunpack.i.h.bf16 %v779_v54  ;;  %v780_v56 = vunpack.i.l.bf16 %v779_v54  ;;  %v784_v57 = vpop.permute.xlu1 %783 }
  0x8a   :  { %v786_v58 = vunpack.i.h.bf16 %v784_v57  ;;  %v785_v59 = vunpack.i.l.bf16 %v784_v57 }
  0x8b   :  { %v575_v61 = vmax.f32 %v565_v19, %v781_v55  ;;  %v574_v62 = vmax.f32 %v564_v18, %v780_v56 }
  0x8c   :  { %v495_v63 = vmax.f32 %v485_v21, %v786_v58  ;;  %v494_v0 = vmax.f32 %v484_v20, %v785_v59  ;;  %v734_v20 = vld [vmem:[%s1009_s1] sm:$0xff]  ;;  %s796_s1 = smov 8  }
  0x8d   :  { %v576_v1 = vpack.c.bf16 %v575_v61, %v574_v62  ;;  %v735_v21 = vld [vmem:[%s1010_s2] sm:$0xff] }
  0x8e   :  { %v496_v2 = vpack.c.bf16 %v495_v63, %v494_v0 }
  0x8f   :  { %263 = vrot.lane.b32.xlu2 %v259_v60, %s795_s0  ;;  %580 = vrot.lane.b32.xlu0 %v576_v1, %s795_s0 }
  0x90   :  { %500 = vrot.lane.b32.xlu1 %v496_v2, %s794_s7 }
  0x97   :  { %788 = vrot.lane.b32.xlu2 %v787_v5, %s792_s24 }
  0xd9   :  { %v104_v14 = vpop.permute.xlu2 %103 }
  0xda   :  { %660 = vmatmul.msk.bf16.vlgmr.msra.gmra.mxu2 %vm38_vm0, %v104_v14  ;;  %665 = vmatmul.msk.bf16.vlgmr.msra.gmra.mxu3 %vm38_vm0, %v104_v14 }
  0xdb   :  { %438 = vmatpush.bf16.msra.mxu2 %v736_v12  ;;  %460 = vmatpush.bf16.msra.mxu3 %v737_v13 }
  0xe1   :  { %v774_v15 = vpop.permute.xlu2 %773 }
  0xe2   :  { %v776_v16 = vunpack.i.h.bf16 %v774_v15  ;;  %v775_v17 = vunpack.i.l.bf16 %v774_v15 }
  0xe4   :  { %v28_v18 = vmax.f32 %v18_v41, %v776_v16  ;;  %v27_v19 = vmax.f32 %v17_v40, %v775_v17 }
  0xe6   :  { %v29_v22 = vpack.c.bf16 %v28_v18, %v27_v19 }
  0xe8   :  { %650 = vmatmul.msk.bf16.vlgmr.msra.gmra.mxu0 %vm38_vm0, %v29_v22  ;;  %655 = vmatmul.msk.bf16.vlgmr.msra.gmra.mxu1 %vm38_vm0, %v29_v22 }
  0xe9   :  { %v264_v25 = vpop.permute.xlu2 %263  ;;  %358 = vmatpush.bf16.msra.mxu0 %v734_v20  ;;  %380 = vmatpush.bf16.msra.mxu1 %v735_v21 }
  0xea   :  { %680 = vmatmul.msk.bf16.vlgmr.msrb.gmra.mxu2 %vm38_vm0, %v264_v25  ;;  %685 = vmatmul.msk.bf16.vlgmr.msrb.gmra.mxu3 %vm38_vm0, %v264_v25 }
  0xeb   :  { %598 = vmatpush.bf16.msrb.mxu2 %v740_v23  ;;  %620 = vmatpush.bf16.msrb.mxu3 %v741_v24 }
  0xf1   :  { %v789_v29 = vpop.permute.xlu2 %788 }
  0xf2   :  { %v184_v26 = vpop.permute.xlu0 %183  ;;  %v791_v31 = vunpack.i.h.bf16 %v789_v29  ;;  %v790_v32 = vunpack.i.l.bf16 %v789_v29 }
  0xf4   :  { %v338_v33 = vmax.f32 %v328_v4, %v791_v31  ;;  %v337_v34 = vmax.f32 %v327_v3, %v790_v32 }
  0xf6   :  { %v339_v35 = vpack.c.bf16 %v338_v33, %v337_v34 }
  0xf8   :  { %670 = vmatmul.msk.bf16.vlgmr.msrb.gmra.mxu0 %vm38_vm0, %v184_v26  ;;  %675 = vmatmul.msk.bf16.vlgmr.msrb.gmra.mxu1 %vm38_vm0, %v184_v26 }
  0xf9   :  { %518 = vmatpush.bf16.msrb.mxu0 %v738_v27  ;;  %540 = vmatpush.bf16.msrb.mxu1 %v739_v28 }
  0xfa   :  { %v421_v30 = vpop.permute.xlu1 %420 }
  0xfb   :  { %700 = vmatmul.msk.bf16.vlgmr.msra.gmra.mxu2 %vm38_vm0, %v421_v30  ;;  %705 = vmatmul.msk.bf16.vlgmr.msra.gmra.mxu3 %vm38_vm0, %v421_v30 }
 0x101   :  { %v581_v36 = vpop.permute.xlu0 %580 }
 0x102   :  { %v501_v37 = vpop.permute.xlu1 %500 }
 0x108   :  { %690 = vmatmul.msk.bf16.vlgmr.msra.gmra.mxu0 %vm38_vm0, %v339_v35  ;;  %695 = vmatmul.msk.bf16.vlgmr.msra.gmra.mxu1 %vm38_vm0, %v339_v35 }
 0x10b   :  { %720 = vmatmul.msk.bf16.vlgmr.msrb.gmra.mxu2 %vm38_vm0, %v581_v36  ;;  %725 = vmatmul.msk.bf16.vlgmr.msrb.gmra.mxu3 %vm38_vm0, %v581_v36 }
 0x118   :  { %710 = vmatmul.msk.bf16.vlgmr.msrb.gmra.mxu0 %vm38_vm0, %v501_v37  ;;  %715 = vmatmul.msk.bf16.vlgmr.msrb.gmra.mxu1 %vm38_vm0, %v501_v37 }
 0x15d   :  { %v123_v38 = vpop.f32.mrf.mxu2  ;;  %v145_v39 = vpop.f32.mrf.mxu3 }
 0x15e   :  { %v150_v40 = vmax.f32 %v123_v38, %v145_v39 }
 0x160   :  { %v152_v41 = vpack.c.bf16 %v150_v40, %v150_v40 }
 0x162   :  { %156 = vrot.lane.b32.xlu2 %v152_v41, %s796_s1 }
 0x165   :  { %v51_v42 = vpop.f32.mrf.mxu0  ;;  %v73_v43 = vpop.f32.mrf.mxu1 }
 0x166   :  { %v78_v44 = vmax.f32 %v51_v42, %v73_v43  ;;  %v125_v45 = vpop.f32.mrf.mxu2  ;;  %v147_v46 = vpop.f32.mrf.mxu3 }
 0x167   :  { %v151_v47 = vmax.f32 %v125_v45, %v147_v46 }
 0x168   :  { %v80_v48 = vpack.c.bf16 %v78_v44, %v78_v44 }
 0x169   :  { %v153_v49 = vpack.c.bf16 %v151_v47, %v151_v47 }
 0x16a   :  { %83 = vst.msk [vmem:[%s1011_s3] sm:$0xf] %vm82_vm1, %v80_v48 }
 0x16b   :  { %158 = vrot.lane.b32.xlu0 %v153_v49, %s796_s1 }
 0x16d   :  { %v53_v50 = vpop.f32.mrf.mxu0  ;;  %v75_v51 = vpop.f32.mrf.mxu1 }
 0x16e   :  { %v79_v52 = vmax.f32 %v53_v50, %v75_v51  ;;  %v283_v53 = vpop.f32.mrf.mxu2  ;;  %v305_v54 = vpop.f32.mrf.mxu3 }
 0x16f   :  { %v310_v55 = vmax.f32 %v283_v53, %v305_v54 }
 0x170   :  { %v81_v56 = vpack.c.bf16 %v79_v52, %v79_v52 }
 0x171   :  { %v312_v57 = vpack.c.bf16 %v310_v55, %v310_v55 }
 0x172   :  { %84 = vst.msk [vmem:[%s1011_s3 + $0x4] sm:$0xf] %vm82_vm1, %v81_v56 }
 0x173   :  { %316 = vrot.lane.b32.xlu0 %v312_v57, %s797_s12 }
 0x175   :  { %v203_v58 = vpop.f32.mrf.mxu0  ;;  %v225_v59 = vpop.f32.mrf.mxu1 }
 0x176   :  { %v230_v60 = vmax.f32 %v203_v58, %v225_v59  ;;  %v285_v61 = vpop.f32.mrf.mxu2  ;;  %v307_v62 = vpop.f32.mrf.mxu3 }
 0x177   :  { %v311_v0 = vmax.f32 %v285_v61, %v307_v62 }
 0x178   :  { %v232_v63 = vpack.c.bf16 %v230_v60, %v230_v60 }
 0x179   :  { %v313_v6 = vpack.c.bf16 %v311_v0, %v311_v0 }
 0x17a   :  { %236 = vrot.lane.b32.xlu1 %v232_v63, %s798_s13 }
 0x17d   :  { %v205_v1 = vpop.f32.mrf.mxu0  ;;  %v227_v2 = vpop.f32.mrf.mxu1 }
 0x17e   :  { %v231_v3 = vmax.f32 %v205_v1, %v227_v2  ;;  %v440_v4 = vpop.f32.mrf.mxu2  ;;  %v462_v5 = vpop.f32.mrf.mxu3 }
 0x17f   :  { %v467_v8 = vmax.f32 %v440_v4, %v462_v5 }
 0x180   :  { %v233_v7 = vpack.c.bf16 %v231_v3, %v231_v3 }
 0x181   :  { %v469_v11 = vpack.c.bf16 %v467_v8, %v467_v8 }
 0x182   :  { %318 = vrot.lane.b32.xlu1 %v313_v6, %s797_s12  ;;  %238 = vrot.lane.b32.xlu2 %v233_v7, %s798_s13 }
 0x185   :  { %v360_v9 = vpop.f32.mrf.mxu0  ;;  %v382_v10 = vpop.f32.mrf.mxu1 }
 0x186   :  { %v387_v12 = vmax.f32 %v360_v9, %v382_v10  ;;  %v442_v13 = vpop.f32.mrf.mxu2  ;;  %v464_v14 = vpop.f32.mrf.mxu3 }
 0x187   :  { %v468_v16 = vmax.f32 %v442_v13, %v464_v14 }
 0x188   :  { %v389_v15 = vpack.c.bf16 %v387_v12, %v387_v12 }
 0x189   :  { %v470_v22 = vpack.c.bf16 %v468_v16, %v468_v16 }
 0x18a   :  { %393 = vrot.lane.b32.xlu2 %v389_v15, %s795_s0  ;;  %473 = vrot.lane.b32.xlu1 %v469_v11, %s799_s14 }
 0x18d   :  { %v362_v17 = vpop.f32.mrf.mxu0  ;;  %v384_v18 = vpop.f32.mrf.mxu1 }
 0x18e   :  { %v388_v19 = vmax.f32 %v362_v17, %v384_v18  ;;  %v600_v20 = vpop.f32.mrf.mxu2  ;;  %v622_v21 = vpop.f32.mrf.mxu3 }
 0x18f   :  { %v627_v24 = vmax.f32 %v600_v20, %v622_v21 }
 0x190   :  { %v390_v23 = vpack.c.bf16 %v388_v19, %v388_v19 }
 0x191   :  { %v629_v27 = vpack.c.bf16 %v627_v24, %v627_v24 }
 0x192   :  { %395 = vrot.lane.b32.xlu0 %v390_v23, %s795_s0  ;;  %475 = vrot.lane.b32.xlu2 %v470_v22, %s799_s14 }
 0x195   :  { %v520_v25 = vpop.f32.mrf.mxu0  ;;  %v542_v26 = vpop.f32.mrf.mxu1 }
 0x196   :  { %v547_v28 = vmax.f32 %v520_v25, %v542_v26  ;;  %v602_v30 = vpop.f32.mrf.mxu2  ;;  %v624_v31 = vpop.f32.mrf.mxu3 }
 0x197   :  { %v628_v32 = vmax.f32 %v602_v30, %v624_v31 }
 0x198   :  { %v549_v29 = vpack.c.bf16 %v547_v28, %v547_v28 }
 0x199   :  { %v630_v36 = vpack.c.bf16 %v628_v32, %v628_v32 }
 0x19a   :  { %553 = vrot.lane.b32.xlu0 %v549_v29, %s800_s15  ;;  %633 = vrot.lane.b32.xlu2 %v629_v27, %s801_s16 }
 0x19d   :  { %v522_v33 = vpop.f32.mrf.mxu0  ;;  %v544_v34 = vpop.f32.mrf.mxu1 }
 0x19e   :  { %v548_v35 = vmax.f32 %v522_v33, %v544_v34 }
 0x1a0   :  { %v550_v37 = vpack.c.bf16 %v548_v35, %v548_v35 }
 0x1a2   :  { %555 = vrot.lane.b32.xlu1 %v550_v37, %s800_s15  ;;  %635 = vrot.lane.b32.xlu0 %v630_v36, %s801_s16 }
 0x1bc   :  { %v157_v38 = vpop.permute.xlu2 %156 }
 0x1bd   :  { %163 = vst.msk [vmem:[%s1011_s3] sm:$0xf] %vm162_vm2, %v157_v38 }
 0x1dc   :  { %v239_v39 = vpop.permute.xlu2 %238 }
 0x1dd   :  { %v159_v40 = vpop.permute.xlu0 %158 }
 0x1de   :  { %164 = vst.msk [vmem:[%s1011_s3 + $0x4] sm:$0xf] %vm162_vm2, %v159_v40 }
 0x1df   :  { %244 = vst.msk [vmem:[%s1011_s3 + $0x4] sm:$0xf] %vm242_vm3, %v239_v39 }
 0x1e4   :  { %v394_v43 = vpop.permute.xlu2 %393 }
 0x1e5   :  { %v317_v41 = vpop.permute.xlu0 %316 }
 0x1ec   :  { %v237_v42 = vpop.permute.xlu1 %236  ;;  %v476_v46 = vpop.permute.xlu2 %475 }
 0x1ed   :  { %243 = vst.msk [vmem:[%s1011_s3] sm:$0xf] %vm242_vm3, %v237_v42 }
 0x1ee   :  { %323 = vst.msk [vmem:[%s1011_s3] sm:$0xf] %vm322_vm4, %v317_v41 }
 0x1ef   :  { %400 = vst.msk [vmem:[%s1011_s3] sm:$0xf] %vm399_vm5, %v394_v43 }
 0x1f4   :  { %v319_v44 = vpop.permute.xlu1 %318  ;;  %v634_v49 = vpop.permute.xlu2 %633 }
 0x1f5   :  { %324 = vst.msk [vmem:[%s1011_s3 + $0x4] sm:$0xf] %vm322_vm4, %v319_v44 }
 0x1fc   :  { %v474_v45 = vpop.permute.xlu1 %473 }
 0x1fd   :  { %480 = vst.msk [vmem:[%s1011_s3] sm:$0xf] %vm479_vm6, %v474_v45 }
 0x204   :  { %v396_v47 = vpop.permute.xlu0 %395 }
 0x205   :  { %401 = vst.msk [vmem:[%s1011_s3 + $0x4] sm:$0xf] %vm399_vm5, %v396_v47 }
 0x206   :  { %481 = vst.msk [vmem:[%s1011_s3 + $0x4] sm:$0xf] %vm479_vm6, %v476_v46 }
 0x20c   :  { %v554_v48 = vpop.permute.xlu0 %553 }
 0x20d   :  { %560 = vst.msk [vmem:[%s1011_s3] sm:$0xf] %vm559_vm7, %v554_v48 }
 0x20e   :  { %640 = vst.msk [vmem:[%s1011_s3] sm:$0xf] %vm639_vm8, %v634_v49 }
 0x214   :  { %v556_v50 = vpop.permute.xlu1 %555  ;;  %v636_v51 = vpop.permute.xlu0 %635 }
 0x215   :  { %561 = vst.msk [vmem:[%s1011_s3 + $0x4] sm:$0xf] %vm559_vm7, %v556_v50 }
 0x216   :  { %641 = vst.msk [vmem:[%s1011_s3 + $0x4] sm:$0xf] %vm639_vm8, %v636_v51 }

// kernel: darknet2_forward.6
= control target key start
LH: loop header
LB: loop body
LE: loop exit
PB: predicated region body
PF: predicated region fallthrough
CT: control target
= control target key end

     0   :  { %v142_v1 = vmov 0   ;;  %vm74_vm0 = vcmask 654336   ;;  %s190_s0 = inlined_call_operand.vmem [shape: bf16[80,128], index: 0, kind: input, shape index: {}]   ;;  %s191_s2 = inlined_call_operand.vmem [shape: f32[16,1], index: 2, kind: input, shape index: {}]   ;;  %s192_s1 = inlined_call_operand.vmem [shape: bf16[16,80], index: 1, kind: input, shape index: {}]   ;;  %s193_s3 = inlined_call_operand.vmem [shape: bf16[16,128], index: 3, kind: output, shape index: {}]  }
   0x1   :  { %v134_v0 = vld [vmem:[%s190_s0 + $0x20] sm:$0xff]  ;;  %141 = vset.pattern.permute.xlu0 %v142_v1  ;;  %v133_v2 = vld [vmem:[%s190_s0 + $0x18] sm:$0xff]  ;;  %v132_v4 = vld [vmem:[%s190_s0 + $0x10] sm:$0xff] }
   0x2   :  { %81 = vmatpush.bf16.msra.mxu0 %v134_v0  ;;  %v27_v3 = vld [vmem:[%s191_s2] sm:$0xff]  ;;  %v28_v5 = vld [vmem:[%s191_s2 + $0x8] sm:$0xff] }
   0x3   :  { %31 = vperm.xlu0 %141, %v27_v3   ;;  %v131_v6 = vld [vmem:[%s190_s0 + $0x8] sm:$0xff]  ;;  %v130_v7 = vld [vmem:[%s190_s0] sm:$0xff] }
   0x4   :  { %v129_v8 = vld [vmem:[%s192_s1] sm:$0xff] }
   0x6   :  { %82 = vmatpush.bf16.msra.mxu0 %v133_v2 }
   0xa   :  { %83 = vmatpush.bf16.msra.mxu0 %v132_v4 }
   0xb   :  { %36 = vperm.xlu0 %141, %v28_v5  }
   0xe   :  { %84 = vmatpush.bf16.msra.mxu0 %v131_v6 }
  0x12   :  { %85 = vmatpush.bf16.msra.mxu0 %v130_v7 }
  0x15   :  { %128 = vmatmul.msk.bf16.vlgmr.msra.gmra.mxu0 %vm74_vm0, %v129_v8 }
  0x75   :  { %v32_v9 = vpop.permute.xlu0 %31 }
  0x7d   :  { %v37_v12 = vpop.permute.xlu0 %36 }
  0x92   :  { %v87_v10 = vpop.f32.mrf.mxu0 }
  0x93   :  { %v88_v11 = vadd.f32 %v87_v10, %v32_v9 }
  0x95   :  { %v92_v14 = vmul.f32 0.1, %v88_v11 }
  0x97   :  { %v94_v17 = vmax.f32 %v88_v11, %v92_v14 }
  0x9a   :  { %v89_v13 = vpop.f32.mrf.mxu0 }
  0x9b   :  { %v90_v15 = vadd.f32 %v89_v13, %v37_v12 }
  0x9d   :  { %v93_v16 = vmul.f32 0.1, %v90_v15 }
  0x9f   :  { %v95_v18 = vmax.f32 %v90_v15, %v93_v16 }
  0xa1   :  { %v138_v19 = vpack.c.bf16 %v95_v18, %v94_v17 }
  0xa3   :  { %139 = vst [vmem:[%s193_s3] sm:$0xff] %v138_v19  }

// kernel: darknet2_forward.7
= control target key start
LH: loop header
LB: loop body
LE: loop exit
PB: predicated region body
PF: predicated region fallthrough
CT: control target
= control target key end

     0   :  { %v384_v0 = vmov 0   ;;  %s385_s24 = smov 127   ;;  %vm57_vm0 = vcmask 130048   ;;  %v386_v12 = vmov 1   ;;  %v388_v13 = vmov 2   ;;  %s508_s3 = inlined_call_operand.vmem [shape: f32[24,4], index: 3, kind: input, shape index: {}]   ;;  %s509_s2 = inlined_call_operand.vmem [shape: f32[24,1], index: 2, kind: input, shape index: {}]   ;;  %s510_s0 = inlined_call_operand.vmem [shape: bf16[16,128], index: 0, kind: input, shape index: {}]   ;;  %s511_s1 = inlined_call_operand.vmem [shape: bf16[24,16], index: 1, kind: input, shape index: {}]   ;;  %s512_s4 = inlined_call_operand.vmem [shape: f32[24,128], index: 4, kind: output, shape index: {0}]   ;;  %s513_s5 = inlined_call_operand.vmem [shape: f32[24,128], index: 5, kind: output, shape index: {1}]  }
   0x1   :  { %351 = vset.pattern.permute.xlu1 %v384_v0  ;;  %350 = vset.pattern.permute.xlu0 %v384_v0  ;;  %v86_v1 = vld [vmem:[%s508_s3 + $0x8] sm:$0xff]  ;;  %v27_v2 = vld [vmem:[%s509_s2 + $0x10] sm:$0xff]  ;;  %v25_v3 = vld [vmem:[%s509_s2] sm:$0xff]  ;;  %v389_v14 = vmov 3   ;;  %v390_v20 = vmov 8.0   ;;  %v105_v26 = vlaneseq }
   0x2   :  { %93 = vrot.lane.b32.xlu2 %v86_v1, %s385_s24  ;;  %40 = vperm.xlu1 %351, %v27_v2   ;;  %v341_v4 = vld [vmem:[%s510_s0] sm:$0xff]  ;;  %v22_v5 = vld [vmem:[%s511_s1 + $0x8] sm:$0xf]  ;;  %v87_v9 = vld [vmem:[%s508_s3 + $0x10] sm:$0xff]  ;;  %364 = vrcp.f32 %v390_v20 }
   0x3   :  { %30 = vperm.xlu0 %350, %v25_v3   ;;  %v340_v6 = vld [vmem:[%s511_s1] sm:$0xff]  ;;  %v48_v7 = vunpack.c.l.b16 %v22_v5  ;;  %352 = vset.pattern.permute.xlu2 %v384_v0  ;;  %v26_v11 = vld [vmem:[%s509_s2 + $0x8] sm:$0xff]  ;;  %s387_s1 = smov 126   ;;  %v106_v34 = vand.u32 127, %v105_v26 }
   0x4   :  { %71 = vmatpush.bf16.msra.mxu0 %v341_v4  ;;  %342 = vmatpush.bf16.msra.mxu1 %v341_v4  ;;  %v85_v10 = vld [vmem:[%s508_s3] sm:$0xff] }
   0x5   :  { %v50_v8 = vpack.c.b16 %v48_v7, %v48_v7  ;;  %v107_v36 = vcvt.s32.f32 %v106_v34 }
   0x7   :  { %338 = vmatmul.msk.bf16.vlgmr.msra.gmra.mxu0 %vm57_vm0, %v340_v6  ;;  %339 = vmatmul.msk.bf16.vlgmr.msra.gmra.mxu1 %vm57_vm0, %v50_v8  ;;  %v110_v45 = vadd.f32 0.5, %v107_v36 }
   0x8   :  { %v365_v24 = vpop.eup %364 }
   0x9   :  { %v112_v25 = vmul.f32 8.0, %v365_v24  ;;  %vm116_vm1 = vweird.f32 %v365_v24 }
   0xa   :  { %95 = vrot.lane.b32.xlu2 %v87_v9, %s385_s24  ;;  %91 = vrot.lane.b32.xlu1 %v85_v10, %s385_s24 }
   0xb   :  { %35 = vperm.xlu0 %350, %v26_v11   ;;  %v113_v29 = vsub.f32 1.0, %v112_v25 }
   0xd   :  { %v114_v35 = vmul.f32 %v365_v24, %v113_v29 }
   0xf   :  { %v115_v39 = vadd.f32 %v365_v24, %v114_v35 }
  0x11   :  { %v117_v47 = vsel %vm116_vm1, %v365_v24, %v115_v39 }
  0x12   :  { %193 = vperm.xlu2 %352, %v87_v9   ;;  %189 = vperm.xlu1 %351, %v86_v1   ;;  %v118_v50 = vmul.f32 %v117_v47, %v110_v45 }
  0x13   :  { %353 = vset.pattern.permute.xlu0 %v386_v12 }
  0x14   :  { %203 = vperm.xlu0 %353, %v85_v10   ;;  %v119_v57 = vfloor.f32 %v118_v50 }
  0x16   :  { %v122_v61 = vadd.f32 0.5, %v119_v57  ;;  %v120_v7 = vmul.f32 8.0, %v119_v57 }
  0x18   :  { %v123_v2 = vmul.f32 %v122_v61, %v117_v47 }
  0x1a   :  { %355 = vset.pattern.permute.xlu2 %v386_v12  ;;  %354 = vset.pattern.permute.xlu1 %v386_v12  ;;  %v124_v8 = vfloor.f32 %v123_v2 }
  0x1b   :  { %211 = vperm.xlu2 %355, %v87_v9   ;;  %207 = vperm.xlu1 %354, %v86_v1  }
  0x1c   :  { %290 = vrot.lane.b32.xlu0 %v87_v9, %s387_s1 }
  0x1d   :  { %358 = vset.pattern.permute.xlu0 %v388_v13 }
  0x23   :  { %288 = vrot.lane.b32.xlu2 %v86_v1, %s387_s1  ;;  %286 = vrot.lane.b32.xlu1 %v85_v10, %s387_s1 }
  0x24   :  { %232 = vperm.xlu0 %358, %v87_v9   ;;  %356 = vset.pattern.permute.xlu1 %v388_v13 }
  0x25   :  { %357 = vset.pattern.permute.xlu2 %v388_v13 }
  0x2b   :  { %224 = vperm.xlu1 %356, %v85_v10   ;;  %228 = vperm.xlu2 %357, %v86_v1  }
  0x2c   :  { %359 = vset.pattern.permute.xlu0 %v384_v0 }
  0x2d   :  { %185 = vperm.xlu0 %359, %v85_v10  }
  0x33   :  { %360 = vset.pattern.permute.xlu1 %v389_v14  ;;  %361 = vset.pattern.permute.xlu2 %v389_v14 }
  0x34   :  { %245 = vperm.xlu1 %360, %v85_v10   ;;  %249 = vperm.xlu2 %361, %v86_v1  }
  0x3c   :  { %253 = vperm.xlu1 %360, %v87_v9   ;;  %362 = vset.pattern.permute.xlu2 %v384_v0 }
  0x44   :  { %363 = vset.pattern.permute.xlu1 %v384_v0 }
  0x5c   :  { %v94_v15 = vpop.permute.xlu2 %93 }
  0x5d   :  { %v101_v16 = vadd.f32 %v94_v15, %v86_v1  ;;  %v121_v15 = vsub.f32 %v107_v36, %v120_v7 }
  0x5f   :  { %266 = vperm.xlu0 %359, %v101_v16   ;;  %v284_v28 = vsub.f32 1.0, %v101_v16  ;;  %v125_v16 = vmul.f32 8.0, %v124_v8 }
  0x64   :  { %v96_v17 = vpop.permute.xlu2 %95 }
  0x65   :  { %v448_v18 = vadd.f32 %v96_v17, %v87_v9 }
  0x67   :  { %271 = vperm.xlu1 %363, %v448_v18   ;;  %v285_v12 = vsub.f32 1.0, %v448_v18 }
  0x6c   :  { %v451_v19 = vpop.permute.xlu2 %193 }
  0x6d   :  { %v198_v36 = vmul.f32 %v451_v19, %v121_v15 }
  0x74   :  { %v41_v21 = vpop.permute.xlu1 %40 }
  0x75   :  { %v453_v22 = vpop.permute.xlu2 %211  ;;  %v31_v23 = vpop.permute.xlu0 %30 }
  0x7c   :  { %v92_v27 = vpop.permute.xlu1 %91 }
  0x7d   :  { %v100_v30 = vadd.f32 %v92_v27, %v85_v10  ;;  %v289_v31 = vpop.permute.xlu2 %288  ;;  %v36_v32 = vpop.permute.xlu0 %35 }
  0x7e   :  { %v296_v33 = vsub.f32 %v284_v28, %v289_v31  ;;  %v126_v31 = vsub.f32 %v119_v57, %v125_v16 }
  0x7f   :  { %261 = vperm.xlu2 %362, %v100_v30   ;;  %v283_v0 = vsub.f32 1.0, %v100_v30 }
  0x80   :  { %305 = vperm.xlu1 %363, %v296_v33   ;;  %v216_v47 = vmul.f32 %v453_v22, %v126_v31 }
  0x84   :  { %v455_v37 = vpop.permute.xlu1 %189  ;;  %v73_v38 = vpop.f32.mrf.mxu0 }
  0x85   :  { %v457_v40 = vadd.f32 %v73_v38, %v31_v23  ;;  %v78_v41 = vpop.f32.mrf.mxu1  ;;  %v197_v57 = vmul.f32 %v455_v37, %v121_v15 }
  0x86   :  { %v459_v42 = vadd.f32 %v78_v41, %v41_v21  ;;  %v461_v43 = vpop.permute.xlu0 %203 }
  0x87   :  { %82 = vst [vmem:[%s512_s4] sm:$0xff] %v457_v40  ;;  %v127_v44 = vsub.f32 0.0, %v457_v40  ;;  %v214_v38 = vmul.f32 %v461_v43, %v126_v31 }
  0x88   :  { %84 = vst [vmem:[%s512_s4 + $0x10] sm:$0xff] %v459_v42  ;;  %v129_v46 = vsub.f32 0.0, %v459_v42 }
  0x89   :  { %v130_v48 = vmul.f32 1.442695, %v127_v44 }
  0x8a   :  { %v134_v49 = vmul.f32 1.442695, %v129_v46 }
  0x8b   :  { %366 = vpow2.f32 %v130_v48 }
  0x8c   :  { %368 = vpow2.f32 %v134_v49  ;;  %v75_v51 = vpop.f32.mrf.mxu0 }
  0x8d   :  { %v473_v52 = vadd.f32 %v75_v51, %v36_v32  ;;  %v475_v53 = vpop.permute.xlu1 %207  ;;  %v80_v54 = vpop.f32.mrf.mxu1 }
  0x8e   :  { %v291_v55 = vpop.permute.xlu0 %290 }
  0x8f   :  { %83 = vst [vmem:[%s512_s4 + $0x8] sm:$0xff] %v473_v52  ;;  %v128_v56 = vsub.f32 0.0, %v473_v52  ;;  %v297_v17 = vsub.f32 %v285_v12, %v291_v55 }
  0x91   :  { %v367_v58 = vpop.eup %366  ;;  %v132_v59 = vmul.f32 1.442695, %v128_v56 }
  0x92   :  { %v369_v60 = vpop.eup %368  ;;  %v136_v62 = vadd.f32 1.0, %v367_v58 }
  0x93   :  { %v138_v63 = vadd.f32 1.0, %v369_v60  ;;  %370 = vpow2.f32 %v132_v59  ;;  %v215_v60 = vmul.f32 %v475_v53, %v126_v31 }
  0x94   :  { %372 = vrcp.f32 %v136_v62  ;;  %v150_v20 = vand.u32 2147483648, %v136_v62  ;;  %v148_v24 = vand.u32 2147483647, %v136_v62  ;;  %vm144_vm3 = vweird.f32 %v136_v62 }
  0x95   :  { %374 = vrcp.f32 %v138_v63  ;;  %v287_v1 = vpop.permute.xlu1 %286  ;;  %v178_v26 = vand.u32 2147483647, %v138_v63  ;;  %v180_v27 = vand.u32 2147483648, %v138_v63  ;;  %vm174_vm6 = vweird.f32 %v138_v63 }
  0x96   :  { %v295_v3 = vsub.f32 %v283_v0, %v287_v1  ;;  %v482_v4 = vpop.permute.xlu0 %232  ;;  %v151_v32 = vor.u32 1.1754944e-38, %v150_v20  ;;  %vm149_vm7 = vcmp.eq.f32.partialorder %v148_v24, 8.507059e+37 }
  0x97   :  { %v181_v41 = vor.u32 1.1754944e-38, %v180_v27  ;;  %vm179_vm9 = vcmp.eq.f32.partialorder %v178_v26, 8.507059e+37 }
  0x98   :  { %300 = vperm.xlu2 %362, %v295_v3   ;;  %v237_v3 = vmul.f32 %v482_v4, %v459_v42 }
  0x99   :  { %v371_v5 = vpop.eup %370 }
  0x9a   :  { %v373_v6 = vpop.eup %372  ;;  %v137_v9 = vadd.f32 1.0, %v371_v5  ;;  %v242_v7 = vmul.f32 1.442695, %v237_v3 }
  0x9b   :  { %v375_v10 = vpop.eup %374  ;;  %v140_v11 = vmul.f32 %v373_v6, %v136_v62  ;;  %vm145_vm2 = vweird.f32 %v373_v6  ;;  %v229_v62 = vpop.permute.xlu2 %228 }
  0x9c   :  { %376 = vrcp.f32 %v137_v9  ;;  %v170_v14 = vmul.f32 %v375_v10, %v138_v63  ;;  %vm175_vm4 = vweird.f32 %v375_v10  ;;  %vm146_vm5 = vmor %vm144_vm3, %vm145_vm2  ;;  %v163_v48 = vand.u32 2147483647, %v137_v9 }
  0x9d   :  { %v141_v13 = vsub.f32 1.0, %v140_v11  ;;  %vm176_vm8 = vmor %vm174_vm6, %vm175_vm4  ;;  %v165_v49 = vand.u32 2147483648, %v137_v9  ;;  %vm159_vm11 = vweird.f32 %v137_v9  ;;  %v236_v63 = vmul.f32 %v229_v62, %v473_v52  ;;  %v225_v0 = vpop.permute.xlu1 %224 }
  0x9e   :  { %v171_v25 = vsub.f32 1.0, %v170_v14  ;;  %vm164_vm13 = vcmp.eq.f32.partialorder %v163_v48, 8.507059e+37  ;;  %v235_v2 = vmul.f32 %v225_v0, %v457_v40 }
  0x9f   :  { %v186_v21 = vpop.permute.xlu0 %185  ;;  %v142_v23 = vmul.f32 %v373_v6, %v141_v13  ;;  %v166_v56 = vor.u32 1.1754944e-38, %v165_v49  ;;  %v240_v1 = vmul.f32 1.442695, %v236_v63 }
  0xa0   :  { %310 = vperm.xlu2 %362, %v297_v17   ;;  %v196_v28 = vmul.f32 %v186_v21, %v121_v15  ;;  %v172_v30 = vmul.f32 %v375_v10, %v171_v25  ;;  %v238_v37 = vmul.f32 1.442695, %v235_v2 }
  0xa1   :  { %v143_v29 = vadd.f32 %v373_v6, %v142_v23  ;;  %378 = vpow2.f32 %v240_v1 }
  0xa2   :  { %v377_v18 = vpop.eup %376  ;;  %v173_v35 = vadd.f32 %v375_v10, %v172_v30  ;;  %380 = vpow2.f32 %v238_v37 }
  0xa3   :  { %v155_v33 = vmul.f32 %v377_v18, %v137_v9  ;;  %v147_v34 = vsel %vm146_vm5, %v373_v6, %v143_v29  ;;  %vm160_vm10 = vweird.f32 %v377_v18  ;;  %v250_v8 = vpop.permute.xlu2 %249  ;;  %382 = vpow2.f32 %v242_v7 }
  0xa4   :  { %v487_v39 = vsel %vm149_vm7, %v151_v32, %v147_v34  ;;  %v177_v46 = vsel %vm176_vm8, %v375_v10, %v173_v35  ;;  %vm161_vm12 = vmor %vm159_vm11, %vm160_vm10 }
  0xa5   :  { %v156_v44 = vsub.f32 1.0, %v155_v33  ;;  %v199_v45 = vadd.f32 %v196_v28, %v487_v39  ;;  %v182_v50 = vsel %vm179_vm9, %v181_v41, %v177_v46 }
  0xa6   :  { %v201_v19 = vadd.f32 %v198_v36, %v182_v50  ;;  %v246_v5 = vpop.permute.xlu1 %245 }
  0xa7   :  { %v157_v51 = vmul.f32 %v377_v18, %v156_v44  ;;  %v217_v54 = vadd.f32 %v214_v38, %v199_v45  ;;  %v379_v6 = vpop.eup %378 }
  0xa8   :  { %v219_v43 = vadd.f32 %v216_v47, %v201_v19  ;;  %v257_v53 = vmul.f32 %v379_v6, %v250_v8  ;;  %v381_v13 = vpop.eup %380 }
  0xa9   :  { %v158_v55 = vadd.f32 %v377_v18, %v157_v51  ;;  %v383_v15 = vpop.eup %382  ;;  %v256_v40 = vmul.f32 %v381_v13, %v246_v5  ;;  %v220_v17 = vmul.f32 32.0, %v217_v54 }
  0xaa   :  { %v278_v52 = vmul.f32 %v257_v53, %v229_v62  ;;  %v222_v42 = vmul.f32 32.0, %v219_v43 }
  0xab   :  { %v162_v58 = vsel %vm161_vm12, %v377_v18, %v158_v55  ;;  %v277_v23 = vmul.f32 %v256_v40, %v225_v0 }
  0xac   :  { %v167_v59 = vsel %vm164_vm13, %v166_v56, %v162_v58 }
  0xad   :  { %v200_v22 = vadd.f32 %v197_v57, %v167_v59 }
  0xae   :  { %v254_v10 = vpop.permute.xlu1 %253 }
  0xaf   :  { %v218_v61 = vadd.f32 %v215_v60, %v200_v22  ;;  %v258_v16 = vmul.f32 %v383_v15, %v254_v10 }
  0xb1   :  { %v221_v9 = vmul.f32 32.0, %v218_v61  ;;  %v279_v24 = vmul.f32 %v258_v16, %v482_v4 }
  0xd1   :  { %v267_v11 = vpop.permute.xlu0 %266 }
  0xd2   :  { %v275_v12 = vmul.f32 %v267_v11, %v221_v9 }
  0xd4   :  { %v281_v14 = vadd.f32 %v278_v52, %v275_v12 }
  0xd9   :  { %v262_v20 = vpop.permute.xlu2 %261  ;;  %v272_v21 = vpop.permute.xlu1 %271 }
  0xda   :  { %v274_v25 = vmul.f32 %v262_v20, %v220_v17  ;;  %v276_v26 = vmul.f32 %v272_v21, %v222_v42 }
  0xdc   :  { %v280_v27 = vadd.f32 %v277_v23, %v274_v25  ;;  %v282_v28 = vadd.f32 %v279_v24, %v276_v26 }
  0xf2   :  { %v301_v29 = vpop.permute.xlu2 %300  ;;  %v306_v30 = vpop.permute.xlu1 %305 }
  0xf3   :  { %v313_v18 = vmul.f32 %v301_v29, %v487_v39  ;;  %v314_v31 = vmul.f32 %v306_v30, %v167_v59 }
  0xf5   :  { %v316_v32 = vadd.f32 %v313_v18, %v280_v27  ;;  %v317_v33 = vadd.f32 %v314_v31, %v281_v14 }
  0xf7   :  { %319 = vst [vmem:[%s513_s5] sm:$0xff] %v316_v32 }
  0xf8   :  { %320 = vst [vmem:[%s513_s5 + $0x8] sm:$0xff] %v317_v33 }
  0xfa   :  { %v311_v4 = vpop.permute.xlu2 %310 }
  0xfb   :  { %v315_v34 = vmul.f32 %v311_v4, %v182_v50 }
  0xfd   :  { %v318_v35 = vadd.f32 %v315_v34, %v282_v28 }
  0xff   :  { %321 = vst [vmem:[%s513_s5 + $0x10] sm:$0xff] %v318_v35 }

</bundles_post_ra>
